<compile_context>
chip_gen: v7x
topology: tpu7x:2x2x1
jax: 0.10.0
libtpu: 0.0.40
codegen_flags: <defaults>
</compile_context>

<pallas_src>
import functools

import jax
import jax.numpy as jnp
from jax.experimental import pallas as pl
from jax.experimental.pallas import tpu as pltpu

LANES = 128  # pad all conv output channels to a full 128-lane vreg width


def _round_up(x, m):
    return (x + m - 1) // m * m


# ---------------------------------------------------------------------------
# Pallas kernel: fused  out = relu(x @ w + b)   (bf16 MXU, f32 accumulate)
# ---------------------------------------------------------------------------
def _mm_bias_relu_kernel(x_ref, w_ref, b_ref, o_ref):
    acc = jnp.dot(x_ref[...], w_ref[...], preferred_element_type=jnp.float32)
    acc = acc + b_ref[...]                     # (1, Np) bias broadcasts over M
    o_ref[...] = jnp.maximum(acc, 0.0).astype(o_ref.dtype)


def matmul_bias_relu(x, w, b, *, tm=256, out_dtype=jnp.bfloat16):
    """x: (M, K), w: (K, Np) with Np % 128 == 0, b: (Np,) -> (M, Np)."""
    M, K = x.shape
    K2, Np = w.shape
    assert K == K2 and Np % LANES == 0

    # M tile: 256 for large M, otherwise the whole (8-aligned) extent.
    tm_eff = min(tm, _round_up(M, 8))
    Mp = _round_up(M, tm_eff)
    if Mp != M:
        x = jnp.pad(x, ((0, Mp - M), (0, 0)))

    out = pl.pallas_call(
        _mm_bias_relu_kernel,
        out_shape=jax.ShapeDtypeStruct((Mp, Np), out_dtype),
        grid=(Mp // tm_eff,),
        in_specs=[
            pl.BlockSpec((tm_eff, K), lambda i: (i, 0)),
            pl.BlockSpec((K, Np), lambda i: (0, 0)),
            pl.BlockSpec((1, Np), lambda i: (0, 0)),
        ],
        out_specs=pl.BlockSpec((tm_eff, Np), lambda i: (i, 0)),
        compiler_params=pltpu.CompilerParams(
            dimension_semantics=("parallel",)),
    )(x.astype(jnp.bfloat16), w.astype(jnp.bfloat16),
      b.reshape(1, Np).astype(jnp.float32))

    return out[:M] if Mp != M else out


# ---------------------------------------------------------------------------
# Pallas kernel: fused  value = (relu(x @ wf + bf) * wh).sum(-1) + bh
# (fc on the MXU, critic head as a VPU lane reduction -> single launch)
# ---------------------------------------------------------------------------
def _fc_head_kernel(x_ref, wf_ref, bf_ref, wh_ref, bh_ref, o_ref):
    h = jnp.dot(x_ref[...], wf_ref[...], preferred_element_type=jnp.float32)
    h = jnp.maximum(h + bf_ref[...], 0.0)                     # (B, 128) f32
    v = jnp.sum(h * wh_ref[...], axis=-1, keepdims=True) + bh_ref[...]
    o_ref[...] = v.astype(o_ref.dtype)


def fc_head(x, wf, bf, wh, bh):
    """x: (B, Kf), wf: (Kf, 128), bf: (128,), wh: (128,), bh: (1,) -> (B, 1)."""
    B, Kf = x.shape
    return pl.pallas_call(
        _fc_head_kernel,
        out_shape=jax.ShapeDtypeStruct((B, 1), jnp.float32),
        grid=(1,),
        in_specs=[
            pl.BlockSpec((B, Kf), lambda i: (0, 0)),
            pl.BlockSpec((Kf, 128), lambda i: (0, 0)),
            pl.BlockSpec((1, 128), lambda i: (0, 0)),
            pl.BlockSpec((1, 128), lambda i: (0, 0)),
            pl.BlockSpec((1, 1), lambda i: (0, 0)),
        ],
        out_specs=pl.BlockSpec((B, 1), lambda i: (0, 0)),
    )(x.astype(jnp.bfloat16), wf.astype(jnp.bfloat16),
      bf.reshape(1, 128).astype(jnp.float32),
      wh.reshape(1, 128).astype(jnp.float32),
      bh.reshape(1, 1).astype(jnp.float32))


# ---------------------------------------------------------------------------
# im2col glue (patch extraction / reshapes stay in plain JAX, fused under jit)
# ---------------------------------------------------------------------------
def im2col(x, k, s):
    """x: (B, H, W, C) -> patches (B*Ho*Wo, k*k*C), plus (B, Ho, Wo)."""
    B, H, W, C = x.shape
    Ho = (H - k) // s + 1
    Wo = (W - k) // s + 1
    cols = []
    for i in range(k):
        for j in range(k):
            cols.append(x[:, i: i + s * Ho: s, j: j + s * Wo: s, :])
    p = jnp.stack(cols, axis=3)                 # (B, Ho, Wo, k*k, C)
    return p.reshape(B * Ho * Wo, k * k * C), (B, Ho, Wo)


def conv2d_relu(x, w_hwio, b, *, stride):
    """Valid conv + ReLU via im2col + fused Pallas matmul (NHWC in/out).

    w_hwio: (k, k, Cin, Cout_padded) -- Cout already zero-padded to 128.
    """
    k = w_hwio.shape[0]
    cin = w_hwio.shape[2]
    cout = w_hwio.shape[3]
    patches, (B, Ho, Wo) = im2col(x, k, stride)
    w2 = w_hwio.reshape(k * k * cin, cout)      # row order matches im2col cols
    out = matmul_bias_relu(patches, w2, b)      # (B*Ho*Wo, Cout_padded)
    return out.reshape(B, Ho, Wo, cout)


# ---------------------------------------------------------------------------
# Deterministic parameter construction (synthetic weights, no checkpoint)
# ---------------------------------------------------------------------------
def _pad_conv(w, cin_p, cout_p):
    k1, k2, cin, cout = w.shape
    return jnp.pad(w, ((0, 0), (0, 0), (0, cin_p - cin), (0, cout_p - cout)))


def make_params(key, in_h, in_w):
    ks = jax.random.split(key, 10)

    def he(k, shape, fan_in):
        return jax.random.normal(k, shape, jnp.float32) * (2.0 / fan_in) ** 0.5

    # conv1: 3->32 k=8 s=4 ; conv2: 32->64 k=4 s=2 ; conv3: 64->64 k=3 s=1
    # (channel dims zero-padded to 128 lanes; padded channels stay exactly 0
    #  through bias=0 + ReLU, so the math is unchanged.)
    w1 = _pad_conv(he(ks[0], (8, 8, 3, 32), 8 * 8 * 3), 3, LANES)
    b1 = jnp.zeros((LANES,), jnp.float32)
    w2 = _pad_conv(he(ks[1], (4, 4, 32, 64), 4 * 4 * 32), LANES, LANES)
    b2 = jnp.zeros((LANES,), jnp.float32)
    w3 = _pad_conv(he(ks[2], (3, 3, 64, 64), 3 * 3 * 64), LANES, LANES)
    b3 = jnp.zeros((LANES,), jnp.float32)

    # conv output spatial sizes (valid conv)
    h = (in_h - 8) // 4 + 1
    h = (h - 4) // 2 + 1
    h = (h - 3) // 1 + 1
    w = (in_w - 8) // 4 + 1
    w = (w - 4) // 2 + 1
    w = (w - 3) // 1 + 1
    flat = 64 * h * w  # PyTorch NCHW flatten size

    # fc: (flat -> 128), rows defined in PyTorch NCHW flatten order (c,i,j).
    # TODO(synk): PyTorch uses nn.init.orthogonal_ for fc; scaled-normal here.
    wf_nchw = he(ks[3], (flat, 128), flat)
    # Fold the NCHW->NHWC(+channel pad to 128) flatten permutation into the
    # weight so no runtime transpose is needed before the fc matmul.
    wf_t = jnp.transpose(wf_nchw.reshape(64, h, w, 128), (1, 2, 0, 3))
    wf_t = jnp.pad(wf_t, ((0, 0), (0, 0), (0, LANES - 64), (0, 0)))
    wf = wf_t.reshape(h * w * LANES, 128)
    bf = jnp.zeros((128,), jnp.float32)

    # critic head: 128 -> 1 (applied as a VPU reduction in the fused kernel)
    wh = he(ks[4], (128,), 128)
    bh = jnp.zeros((1,), jnp.float32)

    return dict(w1=w1, b1=b1, w2=w2, b2=b2, w3=w3, b3=b3,
                wf=wf, bf=bf, wh=wh, bh=bh)


# ---------------------------------------------------------------------------
# Forward pass (mirrors Critic.forward)
# ---------------------------------------------------------------------------
@functools.partial(jax.jit, static_argnums=())
def critic_forward(params, x_nhwc):
    # torch: x.permute(0,3,1,2) then NCHW convs  ==  NHWC convs here.
    x = x_nhwc.astype(jnp.bfloat16)
    x = conv2d_relu(x, params["w1"], params["b1"], stride=4)
    x = conv2d_relu(x, params["w2"], params["b2"], stride=2)
    x = conv2d_relu(x, params["w3"], params["b3"], stride=1)
    B = x.shape[0]
    # NCHW-flatten permutation is folded into wf -> plain NHWC flatten here.
    x = x.reshape(B, -1)                                   # (B, H*W*128)
    state_value = fc_head(x, params["wf"], params["bf"],
                          params["wh"], params["bh"])      # (B, 1)
    return state_value


if __name__ == "__main__":
    key = jax.random.PRNGKey(0)
    k_in, k_par = jax.random.split(key)

    B, H, W, C = 2, 64, 64, 3          # small NHWC input (torch forward expects NHWC)
    x = jax.random.uniform(k_in, (B, H, W, C), jnp.float32)

    params = make_params(k_par, H, W)
    out = critic_forward(params, x)
    out = jax.block_until_ready(out)

    assert out.shape == (B, 1), out.shape
    assert out.dtype == jnp.float32
    assert bool(jnp.all(jnp.isfinite(out)))
    print("KERNEL_OK")
</pallas_src>

<mosaic_0001>
module attributes {stable_mosaic.version = 11 : i64} {
  func.func @_mm_bias_relu_kernel(%arg0: i32, %arg1: memref<256x192xbf16, #tpu.memory_space<vmem>>, %arg2: memref<192x128xbf16, #tpu.memory_space<vmem>>, %arg3: memref<1x128xf32, #tpu.memory_space<vmem>>, %arg4: memref<256x128xbf16, #tpu.memory_space<vmem>>) attributes {dimension_semantics = [#tpu.dimension_semantics<parallel>], iteration_bounds = array<i64: 2>, scalar_prefetch = 0 : i64, scratch_operands = 0 : i64, tpu.core_type = #tpu.core_type<tc>, window_params = [{transform_indices = @transform_0, window_bounds = array<i64: 256, 192>}, {pipeline_mode = #tpu.pipeline_mode<synchronous>, transform_indices = @transform_1, window_bounds = array<i64: 192, 128>}, {pipeline_mode = #tpu.pipeline_mode<synchronous>, transform_indices = @transform_2, window_bounds = array<i64: 1, 128>}, {transform_indices = @transform_3, window_bounds = array<i64: 256, 128>}]} {
    %c0 = arith.constant 0 : index
    %c0_0 = arith.constant 0 : index
    %0 = vector.load %arg1[%c0, %c0_0] : memref<256x192xbf16, #tpu.memory_space<vmem>>, vector<256x192xbf16>
    %c0_1 = arith.constant 0 : index
    %c0_2 = arith.constant 0 : index
    %1 = vector.load %arg2[%c0_1, %c0_2] : memref<192x128xbf16, #tpu.memory_space<vmem>>, vector<192x128xbf16>
    %cst = arith.constant dense<0.000000e+00> : vector<256x128xf32>
    %2 = tpu.matmul %0, %1, %cst {dimension_numbers = #tpu.dot_dimension_numbers<[1], [0], [0], [1], [0, 0, 1, 1], [], []>} : vector<256x192xbf16>, vector<192x128xbf16>, vector<256x128xf32> -> vector<256x128xf32>
    %c0_3 = arith.constant 0 : index
    %c0_4 = arith.constant 0 : index
    %3 = vector.load %arg3[%c0_3, %c0_4] : memref<1x128xf32, #tpu.memory_space<vmem>>, vector<1x128xf32>
    %4 = vector.broadcast %3 : vector<1x128xf32> to vector<256x128xf32>
    %5 = arith.addf %2, %4 : vector<256x128xf32>
    %cst_5 = arith.constant 0.000000e+00 : f32
    %6 = vector.broadcast %cst_5 : f32 to vector<256x128xf32>
    %7 = arith.maximumf %5, %6 : vector<256x128xf32>
    %8 = arith.truncf %7 : vector<256x128xf32> to vector<256x128xbf16>
    %c0_6 = arith.constant 0 : index
    %c0_7 = arith.constant 0 : index
    %9 = vector.load %arg4[%c0_6, %c0_7] : memref<256x128xbf16, #tpu.memory_space<vmem>>, vector<256x128xbf16>
    tpu.vector_store %arg4[%c0_6, %c0_7], %8 {strides = array<i32>} : memref<256x128xbf16, #tpu.memory_space<vmem>>, vector<256x128xbf16>,
    return
  }
  func.func @transform_0(%arg0: i32) -> (i32, i32) {
    %c0_i32 = arith.constant 0 : i32
    %c0_i32_0 = arith.constant 0 : i32
    return %arg0, %c0_i32 : i32, i32
  }
  func.func @transform_1(%arg0: i32) -> (i32, i32) {
    %c0_i32 = arith.constant 0 : i32
    %c0_i32_0 = arith.constant 0 : i32
    %c0_i32_1 = arith.constant 0 : i32
    return %c0_i32, %c0_i32_0 : i32, i32
  }
  func.func @transform_2(%arg0: i32) -> (i32, i32) {
    %c0_i32 = arith.constant 0 : i32
    %c0_i32_0 = arith.constant 0 : i32
    %c0_i32_1 = arith.constant 0 : i32
    return %c0_i32, %c0_i32_0 : i32, i32
  }
  func.func @transform_3(%arg0: i32) -> (i32, i32) {
    %c0_i32 = arith.constant 0 : i32
    %c0_i32_0 = arith.constant 0 : i32
    return %arg0, %c0_i32 : i32, i32
  }
}

module attributes {stable_mosaic.version = 11 : i64} {
  func.func @_mm_bias_relu_kernel(%arg0: i32, %arg1: memref<72x2048xbf16, #tpu.memory_space<vmem>>, %arg2: memref<2048x128xbf16, #tpu.memory_space<vmem>>, %arg3: memref<1x128xf32, #tpu.memory_space<vmem>>, %arg4: memref<72x128xbf16, #tpu.memory_space<vmem>>) attributes {dimension_semantics = [#tpu.dimension_semantics<parallel>], iteration_bounds = array<i64: 1>, scalar_prefetch = 0 : i64, scratch_operands = 0 : i64, tpu.core_type = #tpu.core_type<tc>, window_params = [{transform_indices = @transform_0, window_bounds = array<i64: 72, 2048>}, {pipeline_mode = #tpu.pipeline_mode<synchronous>, transform_indices = @transform_1, window_bounds = array<i64: 2048, 128>}, {pipeline_mode = #tpu.pipeline_mode<synchronous>, transform_indices = @transform_2, window_bounds = array<i64: 1, 128>}, {transform_indices = @transform_3, window_bounds = array<i64: 72, 128>}]} {
    %c0 = arith.constant 0 : index
    %c0_0 = arith.constant 0 : index
    %0 = vector.load %arg1[%c0, %c0_0] : memref<72x2048xbf16, #tpu.memory_space<vmem>>, vector<72x2048xbf16>
    %c0_1 = arith.constant 0 : index
    %c0_2 = arith.constant 0 : index
    %1 = vector.load %arg2[%c0_1, %c0_2] : memref<2048x128xbf16, #tpu.memory_space<vmem>>, vector<2048x128xbf16>
    %cst = arith.constant dense<0.000000e+00> : vector<72x128xf32>
    %2 = tpu.matmul %0, %1, %cst {dimension_numbers = #tpu.dot_dimension_numbers<[1], [0], [0], [1], [0, 0, 1, 1], [], []>} : vector<72x2048xbf16>, vector<2048x128xbf16>, vector<72x128xf32> -> vector<72x128xf32>
    %c0_3 = arith.constant 0 : index
    %c0_4 = arith.constant 0 : index
    %3 = vector.load %arg3[%c0_3, %c0_4] : memref<1x128xf32, #tpu.memory_space<vmem>>, vector<1x128xf32>
    %4 = vector.broadcast %3 : vector<1x128xf32> to vector<72x128xf32>
    %5 = arith.addf %2, %4 : vector<72x128xf32>
    %cst_5 = arith.constant 0.000000e+00 : f32
    %6 = vector.broadcast %cst_5 : f32 to vector<72x128xf32>
    %7 = arith.maximumf %5, %6 : vector<72x128xf32>
    %8 = arith.truncf %7 : vector<72x128xf32> to vector<72x128xbf16>
    %c0_6 = arith.constant 0 : index
    %c0_7 = arith.constant 0 : index
    %9 = vector.load %arg4[%c0_6, %c0_7] : memref<72x128xbf16, #tpu.memory_space<vmem>>, vector<72x128xbf16>
    tpu.vector_store %arg4[%c0_6, %c0_7], %8 {strides = array<i32>} : memref<72x128xbf16, #tpu.memory_space<vmem>>, vector<72x128xbf16>,
    return
  }
  func.func @transform_0(%arg0: i32) -> (i32, i32) {
    %c0_i32 = arith.constant 0 : i32
    %c0_i32_0 = arith.constant 0 : i32
    return %arg0, %c0_i32 : i32, i32
  }
  func.func @transform_1(%arg0: i32) -> (i32, i32) {
    %c0_i32 = arith.constant 0 : i32
    %c0_i32_0 = arith.constant 0 : i32
    %c0_i32_1 = arith.constant 0 : i32
    return %c0_i32, %c0_i32_0 : i32, i32
  }
  func.func @transform_2(%arg0: i32) -> (i32, i32) {
    %c0_i32 = arith.constant 0 : i32
    %c0_i32_0 = arith.constant 0 : i32
    %c0_i32_1 = arith.constant 0 : i32
    return %c0_i32, %c0_i32_0 : i32, i32
  }
  func.func @transform_3(%arg0: i32) -> (i32, i32) {
    %c0_i32 = arith.constant 0 : i32
    %c0_i32_0 = arith.constant 0 : i32
    return %arg0, %c0_i32 : i32, i32
  }
}

module attributes {stable_mosaic.version = 11 : i64} {
  func.func @_mm_bias_relu_kernel(%arg0: i32, %arg1: memref<32x1152xbf16, #tpu.memory_space<vmem>>, %arg2: memref<1152x128xbf16, #tpu.memory_space<vmem>>, %arg3: memref<1x128xf32, #tpu.memory_space<vmem>>, %arg4: memref<32x128xbf16, #tpu.memory_space<vmem>>) attributes {dimension_semantics = [#tpu.dimension_semantics<parallel>], iteration_bounds = array<i64: 1>, scalar_prefetch = 0 : i64, scratch_operands = 0 : i64, tpu.core_type = #tpu.core_type<tc>, window_params = [{transform_indices = @transform_0, window_bounds = array<i64: 32, 1152>}, {pipeline_mode = #tpu.pipeline_mode<synchronous>, transform_indices = @transform_1, window_bounds = array<i64: 1152, 128>}, {pipeline_mode = #tpu.pipeline_mode<synchronous>, transform_indices = @transform_2, window_bounds = array<i64: 1, 128>}, {transform_indices = @transform_3, window_bounds = array<i64: 32, 128>}]} {
    %c0 = arith.constant 0 : index
    %c0_0 = arith.constant 0 : index
    %0 = vector.load %arg1[%c0, %c0_0] : memref<32x1152xbf16, #tpu.memory_space<vmem>>, vector<32x1152xbf16>
    %c0_1 = arith.constant 0 : index
    %c0_2 = arith.constant 0 : index
    %1 = vector.load %arg2[%c0_1, %c0_2] : memref<1152x128xbf16, #tpu.memory_space<vmem>>, vector<1152x128xbf16>
    %cst = arith.constant dense<0.000000e+00> : vector<32x128xf32>
    %2 = tpu.matmul %0, %1, %cst {dimension_numbers = #tpu.dot_dimension_numbers<[1], [0], [0], [1], [0, 0, 1, 1], [], []>} : vector<32x1152xbf16>, vector<1152x128xbf16>, vector<32x128xf32> -> vector<32x128xf32>
    %c0_3 = arith.constant 0 : index
    %c0_4 = arith.constant 0 : index
    %3 = vector.load %arg3[%c0_3, %c0_4] : memref<1x128xf32, #tpu.memory_space<vmem>>, vector<1x128xf32>
    %4 = vector.broadcast %3 : vector<1x128xf32> to vector<32x128xf32>
    %5 = arith.addf %2, %4 : vector<32x128xf32>
    %cst_5 = arith.constant 0.000000e+00 : f32
    %6 = vector.broadcast %cst_5 : f32 to vector<32x128xf32>
    %7 = arith.maximumf %5, %6 : vector<32x128xf32>
    %8 = arith.truncf %7 : vector<32x128xf32> to vector<32x128xbf16>
    %c0_6 = arith.constant 0 : index
    %c0_7 = arith.constant 0 : index
    %9 = vector.load %arg4[%c0_6, %c0_7] : memref<32x128xbf16, #tpu.memory_space<vmem>>, vector<32x128xbf16>
    tpu.vector_store %arg4[%c0_6, %c0_7], %8 {strides = array<i32>} : memref<32x128xbf16, #tpu.memory_space<vmem>>, vector<32x128xbf16>,
    return
  }
  func.func @transform_0(%arg0: i32) -> (i32, i32) {
    %c0_i32 = arith.constant 0 : i32
    %c0_i32_0 = arith.constant 0 : i32
    return %arg0, %c0_i32 : i32, i32
  }
  func.func @transform_1(%arg0: i32) -> (i32, i32) {
    %c0_i32 = arith.constant 0 : i32
    %c0_i32_0 = arith.constant 0 : i32
    %c0_i32_1 = arith.constant 0 : i32
    return %c0_i32, %c0_i32_0 : i32, i32
  }
  func.func @transform_2(%arg0: i32) -> (i32, i32) {
    %c0_i32 = arith.constant 0 : i32
    %c0_i32_0 = arith.constant 0 : i32
    %c0_i32_1 = arith.constant 0 : i32
    return %c0_i32, %c0_i32_0 : i32, i32
  }
  func.func @transform_3(%arg0: i32) -> (i32, i32) {
    %c0_i32 = arith.constant 0 : i32
    %c0_i32_0 = arith.constant 0 : i32
    return %arg0, %c0_i32 : i32, i32
  }
}

module attributes {stable_mosaic.version = 11 : i64} {
  func.func @_fc_head_kernel(%arg0: i32, %arg1: memref<2x2048xbf16, #tpu.memory_space<vmem>>, %arg2: memref<2048x128xbf16, #tpu.memory_space<vmem>>, %arg3: memref<1x128xf32, #tpu.memory_space<vmem>>, %arg4: memref<1x128xf32, #tpu.memory_space<vmem>>, %arg5: memref<1x1xf32, #tpu.memory_space<vmem>>, %arg6: memref<2x1xf32, #tpu.memory_space<vmem>>) attributes {dimension_semantics = [#tpu.dimension_semantics<arbitrary>], iteration_bounds = array<i64: 1>, scalar_prefetch = 0 : i64, scratch_operands = 0 : i64, tpu.core_type = #tpu.core_type<tc>, window_params = [{pipeline_mode = #tpu.pipeline_mode<synchronous>, transform_indices = @transform_0, window_bounds = array<i64: 2, 2048>}, {pipeline_mode = #tpu.pipeline_mode<synchronous>, transform_indices = @transform_1, window_bounds = array<i64: 2048, 128>}, {pipeline_mode = #tpu.pipeline_mode<synchronous>, transform_indices = @transform_2, window_bounds = array<i64: 1, 128>}, {pipeline_mode = #tpu.pipeline_mode<synchronous>, transform_indices = @transform_3, window_bounds = array<i64: 1, 128>}, {pipeline_mode = #tpu.pipeline_mode<synchronous>, transform_indices = @transform_4, window_bounds = array<i64: 1, 1>}, {pipeline_mode = #tpu.pipeline_mode<synchronous>, transform_indices = @transform_5, window_bounds = array<i64: 2, 1>}]} {
    %c0 = arith.constant 0 : index
    %c0_0 = arith.constant 0 : index
    %0 = vector.load %arg1[%c0, %c0_0] : memref<2x2048xbf16, #tpu.memory_space<vmem>>, vector<2x2048xbf16>
    %c0_1 = arith.constant 0 : index
    %c0_2 = arith.constant 0 : index
    %1 = vector.load %arg2[%c0_1, %c0_2] : memref<2048x128xbf16, #tpu.memory_space<vmem>>, vector<2048x128xbf16>
    %cst = arith.constant dense<0.000000e+00> : vector<2x128xf32>
    %2 = tpu.matmul %0, %1, %cst {dimension_numbers = #tpu.dot_dimension_numbers<[1], [0], [0], [1], [0, 0, 1, 1], [], []>} : vector<2x2048xbf16>, vector<2048x128xbf16>, vector<2x128xf32> -> vector<2x128xf32>
    %c0_3 = arith.constant 0 : index
    %c0_4 = arith.constant 0 : index
    %3 = vector.load %arg3[%c0_3, %c0_4] : memref<1x128xf32, #tpu.memory_space<vmem>>, vector<1x128xf32>
    %4 = vector.broadcast %3 : vector<1x128xf32> to vector<2x128xf32>
    %5 = arith.addf %2, %4 : vector<2x128xf32>
    %cst_5 = arith.constant 0.000000e+00 : f32
    %6 = vector.broadcast %cst_5 : f32 to vector<2x128xf32>
    %7 = arith.maximumf %5, %6 : vector<2x128xf32>
    %c0_6 = arith.constant 0 : index
    %c0_7 = arith.constant 0 : index
    %8 = vector.load %arg4[%c0_6, %c0_7] : memref<1x128xf32, #tpu.memory_space<vmem>>, vector<1x128xf32>
    %9 = vector.broadcast %8 : vector<1x128xf32> to vector<2x128xf32>
    %10 = arith.mulf %7, %9 : vector<2x128xf32>
    %cst_8 = arith.constant dense<0.000000e+00> : vector<2xf32>
    %11 = vector.multi_reduction <add>, %10, %cst_8 [1] : vector<2x128xf32> to vector<2xf32>
    %12 = vector.shape_cast %11 : vector<2xf32> to vector<2x1xf32>
    %c0_9 = arith.constant 0 : index
    %c0_10 = arith.constant 0 : index
    %13 = vector.load %arg5[%c0_9, %c0_10] : memref<1x1xf32, #tpu.memory_space<vmem>>, vector<1x1xf32>
    %14 = vector.broadcast %13 : vector<1x1xf32> to vector<2x1xf32>
    %15 = arith.addf %12, %14 : vector<2x1xf32>
    %c0_11 = arith.constant 0 : index
    %c0_12 = arith.constant 0 : index
    %16 = vector.load %arg6[%c0_11, %c0_12] : memref<2x1xf32, #tpu.memory_space<vmem>>, vector<2x1xf32>
    tpu.vector_store %arg6[%c0_11, %c0_12], %15 {strides = array<i32>} : memref<2x1xf32, #tpu.memory_space<vmem>>, vector<2x1xf32>,
    return
  }
  func.func @transform_0(%arg0: i32) -> (i32, i32) {
    %c0_i32 = arith.constant 0 : i32
    %c0_i32_0 = arith.constant 0 : i32
    %c0_i32_1 = arith.constant 0 : i32
    return %c0_i32, %c0_i32_0 : i32, i32
  }
  func.func @transform_1(%arg0: i32) -> (i32, i32) {
    %c0_i32 = arith.constant 0 : i32
    %c0_i32_0 = arith.constant 0 : i32
    %c0_i32_1 = arith.constant 0 : i32
    return %c0_i32, %c0_i32_0 : i32, i32
  }
  func.func @transform_2(%arg0: i32) -> (i32, i32) {
    %c0_i32 = arith.constant 0 : i32
    %c0_i32_0 = arith.constant 0 : i32
    %c0_i32_1 = arith.constant 0 : i32
    return %c0_i32, %c0_i32_0 : i32, i32
  }
  func.func @transform_3(%arg0: i32) -> (i32, i32) {
    %c0_i32 = arith.constant 0 : i32
    %c0_i32_0 = arith.constant 0 : i32
    %c0_i32_1 = arith.constant 0 : i32
    return %c0_i32, %c0_i32_0 : i32, i32
  }
  func.func @transform_4(%arg0: i32) -> (i32, i32) {
    %c0_i32 = arith.constant 0 : i32
    %c0_i32_0 = arith.constant 0 : i32
    %c0_i32_1 = arith.constant 0 : i32
    return %c0_i32, %c0_i32_0 : i32, i32
  }
  func.func @transform_5(%arg0: i32) -> (i32, i32) {
    %c0_i32 = arith.constant 0 : i32
    %c0_i32_0 = arith.constant 0 : i32
    %c0_i32_1 = arith.constant 0 : i32
    return %c0_i32, %c0_i32_0 : i32, i32
  }
}

</mosaic_0001>

<bundles_post_ra>
// kernel: critic_forward.4
= control target key start
LH: loop header
LB: loop body
LE: loop exit
PB: predicated region body
PF: predicated region fallthrough
CT: control target
= control target key end

     0   :  { %s1270_s12 = smov 0   ;;  %s1456_s0 = inlined_call_operand.vmem [shape: bf16[512,192], index: 0, kind: input, shape index: {}]   ;;  %s1457_s1 = inlined_call_operand.vmem [shape: bf16[192,128], index: 1, kind: input, shape index: {}]   ;;  %s1458_s2 = inlined_call_operand.vmem [shape: f32[1,128], index: 2, kind: input, shape index: {}]   ;;  %s1459_s3 = inlined_call_operand.vmem [shape: bf16[512,128], index: 3, kind: output, shape index: {}]  }
   0x1 LB: > { %s915_s13 = sadd.s32 4294967295, %s1247_s12   ;;  %p919_p0 = scmp.ge.s32.totalorder %s1247_s12, 1  ;;  %s1247_s12 = sphi %s1270_s12, %s13_s12  }
   0x2   : > { %p139_p1 = scmp.lt.s32.totalorder %s1247_s12, 3 }
   0x4   : > { %p140_p2 = pnand %p919_p0, %p139_p1 }
   0x5   : > { %v1181_v0 = vld [vmem:[%s1457_s1] sm:$0xff] (!%p140_p2)   ;;  %v1249_v1 = vmov (!%p140_p2), 0   ;;  %s920_s16 = sshll.u32 (!%p140_p2), %s915_s13, 5  ;;  %v1182_v2 = vld [vmem:[%s1457_s1 + $0x8] sm:$0xff] (!%p140_p2)   ;;  %v1183_v3 = vld [vmem:[%s1457_s1 + $0x10] sm:$0xff] (!%p140_p2)   ;;  %vm457_vm0 = vcmask (!%p140_p2), 523264  }
   0x6   : > { %143 = sbr.rel (%p140_p2) target bundleno = 331 (0x14b), region = 32  ;;  %506 = vmatprep.subr.bf16.mxu0 (!%p140_p2), %v1249_v1  ;;  %1148 = vmatprep.subr.bf16.mxu1 (!%p140_p2), %v1249_v1  ;;  %p165_p3 = scmp.lt.s32.totalorder (!%p140_p2), %s920_s16, 63  ;;  %v1184_v4 = vld [vmem:[%s1457_s1 + $0x18] sm:$0xff] (!%p140_p2)   ;;  %v1185_v6 = vld [vmem:[%s1457_s1 + $0x20] sm:$0xff] (!%p140_p2)   ;;  %v1186_v8 = vld [vmem:[%s1457_s1 + $0x28] sm:$0xff] (!%p140_p2)  }
   0x7   : > { %507 = vmatpush1.bf16.msra.mxu0 (!%p140_p2), %v1181_v0  ;;  %1160 = vmatpush1.bf16.msra.mxu1 (!%p140_p2), %v1181_v0  ;;  %v1187_v9 = vld [vmem:[%s1457_s1 + $0x30] sm:$0xff] (!%p140_p2)   ;;  %v1188_v10 = vld [vmem:[%s1457_s1 + $0x38] sm:$0xff] (!%p140_p2)   ;;  %v1189_v11 = vld [vmem:[%s1457_s1 + $0x40] sm:$0xff] (!%p140_p2)  }
   0x8   : > { %508 = vmatprep.subr.bf16.mxu0 (!%p140_p2), %v1249_v1  ;;  %1149 = vmatprep.subr.bf16.mxu1 (!%p140_p2), %v1249_v1  ;;  %v1190_v12 = vld [vmem:[%s1457_s1 + $0x48] sm:$0xff] (!%p140_p2)   ;;  %v1191_v13 = vld [vmem:[%s1457_s1 + $0x50] sm:$0xff] (!%p140_p2)   ;;  %v1192_v14 = vld [vmem:[%s1457_s1 + $0x58] sm:$0xff] (!%p140_p2)  }
   0x9   : > { %v1397_v45 = vld [vmem:[%s1458_s2] ss:$0 sm:$0xff] (!%p140_p2) }
   0xb   : > { %509 = vmatpush1.bf16.msra.mxu0 (!%p140_p2), %v1182_v2  ;;  %1161 = vmatpush1.bf16.msra.mxu1 (!%p140_p2), %v1182_v2 }
   0xc   : > { %510 = vmatprep.subr.bf16.mxu0 (!%p140_p2), %v1249_v1  ;;  %1150 = vmatprep.subr.bf16.mxu1 (!%p140_p2), %v1249_v1 }
   0xd   : > { %s1461_s16 = smov (!%p165_p3, %s920_s16), 63 }
   0xe   : > { %s1020_s21 = sshll.u32 %s1461_s16, 3  ;;  %s924_s20 = sshll.u32 %s1461_s16, 2 }
   0xf   : > { %511 = vmatpush1.bf16.msra.mxu0 %v1183_v3  ;;  %1162 = vmatpush1.bf16.msra.mxu1 %v1183_v3  ;;  %s1302_s26 = scalar_lea.vmem %s1456_s0, %s1020_s21  ;;  %s1407_s23 = scalar_lea.vmem %s1459_s3, %s924_s20 }
  0x10   : > { %512 = vmatprep.subr.bf16.mxu0 %v1249_v1  ;;  %1151 = vmatprep.subr.bf16.mxu1 %v1249_v1  ;;  %v1195_v5 = vld [vmem:[%s1302_s26 + $0x4] ss:$8 sps:$4 sm:$0xff]   ;;  %v1193_v15 = vld [vmem:[%s1302_s26] ss:$8 sps:$4 sm:$0xff]   ;;  %v1199_v17 = vld [vmem:[%s1302_s26 + $0x14] ss:$8 sps:$4 sm:$0xff]  }
  0x11   : > { %v1198_v7 = vld [vmem:[%s1302_s26 + $0x84] ss:$8 sps:$4 sm:$0xff]   ;;  %970 = vmatprep.mubr.msk.bf16.mxu0 %vm457_vm0, %v1195_v5  ;;  %v1196_v16 = vld [vmem:[%s1302_s26 + $0x80] ss:$8 sps:$4 sm:$0xff]   ;;  %v1201_v18 = vld [vmem:[%s1302_s26 + $0x94] ss:$8 sps:$4 sm:$0xff]  }
  0x12   : > { %978 = vmatprep.mubr.msk.bf16.mxu1 %vm457_vm0, %v1198_v7  ;;  %v1203_v19 = vld [vmem:[%s1302_s26 + $0x10] ss:$8 sps:$4 sm:$0xff]   ;;  %v1205_v21 = vld [vmem:[%s1302_s26 + $0x24] ss:$8 sps:$4 sm:$0xff]   ;;  %v1209_v23 = vld [vmem:[%s1302_s26 + $0x20] ss:$8 sps:$4 sm:$0xff]  }
  0x13   : > { %513 = vmatpush1.bf16.msra.mxu0 %v1184_v4  ;;  %1163 = vmatpush1.bf16.msra.mxu1 %v1184_v4  ;;  %v1204_v20 = vld [vmem:[%s1302_s26 + $0x90] ss:$8 sps:$4 sm:$0xff]   ;;  %v1207_v22 = vld [vmem:[%s1302_s26 + $0xa4] ss:$8 sps:$4 sm:$0xff]   ;;  %v1210_v24 = vld [vmem:[%s1302_s26 + $0xa0] ss:$8 sps:$4 sm:$0xff]  }
  0x14   : > { %514 = vmatprep.subr.bf16.mxu0 %v1249_v1  ;;  %1152 = vmatprep.subr.bf16.mxu1 %v1249_v1  ;;  %v1211_v25 = vld [vmem:[%s1302_s26 + $0x34] ss:$8 sps:$4 sm:$0xff]   ;;  %v1215_v27 = vld [vmem:[%s1302_s26 + $0x30] ss:$8 sps:$4 sm:$0xff]   ;;  %v1217_v29 = vld [vmem:[%s1302_s26 + $0x44] ss:$8 sps:$4 sm:$0xff]  }
  0x15   : > { %v1213_v26 = vld [vmem:[%s1302_s26 + $0xb4] ss:$8 sps:$4 sm:$0xff]   ;;  %v1216_v28 = vld [vmem:[%s1302_s26 + $0xb0] ss:$8 sps:$4 sm:$0xff]   ;;  %v1219_v30 = vld [vmem:[%s1302_s26 + $0xc4] ss:$8 sps:$4 sm:$0xff]  }
  0x16   : > { %v1221_v31 = vld [vmem:[%s1302_s26 + $0x40] ss:$8 sps:$4 sm:$0xff]   ;;  %v1223_v33 = vld [vmem:[%s1302_s26 + $0x54] ss:$8 sps:$4 sm:$0xff]   ;;  %v1227_v35 = vld [vmem:[%s1302_s26 + $0x50] ss:$8 sps:$4 sm:$0xff]  }
  0x17   : > { %515 = vmatpush1.bf16.msra.mxu0 %v1185_v6  ;;  %1164 = vmatpush1.bf16.msra.mxu1 %v1185_v6  ;;  %v1222_v32 = vld [vmem:[%s1302_s26 + $0xc0] ss:$8 sps:$4 sm:$0xff]   ;;  %v1225_v34 = vld [vmem:[%s1302_s26 + $0xd4] ss:$8 sps:$4 sm:$0xff]   ;;  %v1228_v36 = vld [vmem:[%s1302_s26 + $0xd0] ss:$8 sps:$4 sm:$0xff]  }
  0x18   : > { %516 = vmatprep.subr.bf16.mxu0 %v1249_v1  ;;  %1153 = vmatprep.subr.bf16.mxu1 %v1249_v1  ;;  %v1229_v37 = vld [vmem:[%s1302_s26 + $0x64] ss:$8 sps:$4 sm:$0xff]   ;;  %v1233_v39 = vld [vmem:[%s1302_s26 + $0x60] ss:$8 sps:$4 sm:$0xff]   ;;  %v1235_v41 = vld [vmem:[%s1302_s26 + $0x74] ss:$8 sps:$4 sm:$0xff]  }
  0x19   : > { %v1231_v38 = vld [vmem:[%s1302_s26 + $0xe4] ss:$8 sps:$4 sm:$0xff]   ;;  %v1234_v40 = vld [vmem:[%s1302_s26 + $0xe0] ss:$8 sps:$4 sm:$0xff]   ;;  %v1237_v42 = vld [vmem:[%s1302_s26 + $0xf4] ss:$8 sps:$4 sm:$0xff]  }
  0x1a   : > { %v1239_v43 = vld [vmem:[%s1302_s26 + $0x70] ss:$8 sps:$4 sm:$0xff]  }
  0x1b   : > { %517 = vmatpush1.bf16.msra.mxu0 %v1186_v8  ;;  %1165 = vmatpush1.bf16.msra.mxu1 %v1186_v8  ;;  %v1240_v44 = vld [vmem:[%s1302_s26 + $0xf0] ss:$8 sps:$4 sm:$0xff]  }
  0x1c   : > { %518 = vmatprep.subr.bf16.mxu0 %v1249_v1  ;;  %1154 = vmatprep.subr.bf16.mxu1 %v1249_v1 }
  0x1f   : > { %519 = vmatpush1.bf16.msra.mxu0 %v1187_v9  ;;  %1166 = vmatpush1.bf16.msra.mxu1 %v1187_v9 }
  0x20   : > { %520 = vmatprep.subr.bf16.mxu0 %v1249_v1  ;;  %1155 = vmatprep.subr.bf16.mxu1 %v1249_v1 }
  0x23   : > { %521 = vmatpush1.bf16.msra.mxu0 %v1188_v10  ;;  %1167 = vmatpush1.bf16.msra.mxu1 %v1188_v10 }
  0x24   : > { %522 = vmatprep.subr.bf16.mxu0 %v1249_v1  ;;  %1156 = vmatprep.subr.bf16.mxu1 %v1249_v1 }
  0x27   : > { %523 = vmatpush1.bf16.msra.mxu0 %v1189_v11  ;;  %1168 = vmatpush1.bf16.msra.mxu1 %v1189_v11 }
  0x28   : > { %524 = vmatprep.subr.bf16.mxu0 %v1249_v1  ;;  %1157 = vmatprep.subr.bf16.mxu1 %v1249_v1 }
  0x2b   : > { %525 = vmatpush1.bf16.msra.mxu0 %v1190_v12  ;;  %1169 = vmatpush1.bf16.msra.mxu1 %v1190_v12 }
  0x2c   : > { %526 = vmatprep.subr.bf16.mxu0 %v1249_v1  ;;  %1158 = vmatprep.subr.bf16.mxu1 %v1249_v1 }
  0x2f   : > { %527 = vmatpush1.bf16.msra.mxu0 %v1191_v13  ;;  %1170 = vmatpush1.bf16.msra.mxu1 %v1191_v13 }
  0x30   : > { %528 = vmatprep.subr.bf16.mxu0 %v1249_v1  ;;  %1159 = vmatprep.subr.bf16.mxu1 %v1249_v1 }
  0x33   : > { %529 = vmatpush1.bf16.msra.mxu0 %v1192_v14  ;;  %1171 = vmatpush1.bf16.msra.mxu1 %v1192_v14 }
  0x36   : > { %539 = vmatmul.mubr.bf16.vlgmr.msra.gmra.mrb[0].mxu0 %v1193_v15  ;;  %603 = vmatmul.mubr.bf16.vlgmr.msra.gmra.mrb[0].mxu1 %v1196_v16 }
  0x37   : > { %971 = vmatprep.mubr.msk.bf16.mxu0 %vm457_vm0, %v1199_v17  ;;  %979 = vmatprep.mubr.msk.bf16.mxu1 %vm457_vm0, %v1201_v18 }
  0x3e   : > { %547 = vmatmul.mubr.bf16.gmra.mrb[4].mxu0 %v1203_v19  ;;  %611 = vmatmul.mubr.bf16.gmra.mrb[4].mxu1 %v1204_v20 }
  0x3f   : > { %972 = vmatprep.mubr.msk.bf16.mxu0 %vm457_vm0, %v1205_v21  ;;  %980 = vmatprep.mubr.msk.bf16.mxu1 %vm457_vm0, %v1207_v22 }
  0x46   : > { %555 = vmatmul.mubr.bf16.gmra.mrb[8].mxu0 %v1209_v23  ;;  %619 = vmatmul.mubr.bf16.gmra.mrb[8].mxu1 %v1210_v24 }
  0x47   : > { %973 = vmatprep.mubr.msk.bf16.mxu0 %vm457_vm0, %v1211_v25  ;;  %981 = vmatprep.mubr.msk.bf16.mxu1 %vm457_vm0, %v1213_v26 }
  0x4e   : > { %563 = vmatmul.mubr.bf16.gmra.mrb[12].mxu0 %v1215_v27  ;;  %627 = vmatmul.mubr.bf16.gmra.mrb[12].mxu1 %v1216_v28 }
  0x4f   : > { %974 = vmatprep.mubr.msk.bf16.mxu0 %vm457_vm0, %v1217_v29  ;;  %982 = vmatprep.mubr.msk.bf16.mxu1 %vm457_vm0, %v1219_v30 }
  0x56   : > { %571 = vmatmul.mubr.bf16.gmra.mrb[16].mxu0 %v1221_v31  ;;  %635 = vmatmul.mubr.bf16.gmra.mrb[16].mxu1 %v1222_v32 }
  0x57   : > { %975 = vmatprep.mubr.msk.bf16.mxu0 %vm457_vm0, %v1223_v33  ;;  %983 = vmatprep.mubr.msk.bf16.mxu1 %vm457_vm0, %v1225_v34 }
  0x5e   : > { %579 = vmatmul.mubr.bf16.gmra.mrb[20].mxu0 %v1227_v35  ;;  %643 = vmatmul.mubr.bf16.gmra.mrb[20].mxu1 %v1228_v36 }
  0x5f   : > { %976 = vmatprep.mubr.msk.bf16.mxu0 %vm457_vm0, %v1229_v37  ;;  %984 = vmatprep.mubr.msk.bf16.mxu1 %vm457_vm0, %v1231_v38 }
  0x66   : > { %587 = vmatmul.mubr.bf16.gmra.mrb[24].mxu0 %v1233_v39  ;;  %651 = vmatmul.mubr.bf16.gmra.mrb[24].mxu1 %v1234_v40 }
  0x67   : > { %977 = vmatprep.mubr.msk.bf16.mxu0 %vm457_vm0, %v1235_v41  ;;  %985 = vmatprep.mubr.msk.bf16.mxu1 %vm457_vm0, %v1237_v42 }
  0x6e   : > { %595 = vmatmul.mubr.bf16.gmra.mrb[28].mxu0 %v1239_v43  ;;  %659 = vmatmul.mubr.bf16.gmra.mrb[28].mxu1 %v1240_v44 }
 0x109   : > { %v540_v46 = vpop.f32.mrb[0].mxu0  ;;  %v604_v47 = vpop.f32.mrb[0].mxu1 }
 0x10a   : > { %v541_v48 = vadd.f32 %v1397_v45, %v540_v46  ;;  %v605_v49 = vadd.f32 %v1397_v45, %v604_v47  ;;  %v542_v50 = vpop.f32.mrb[1].mxu0  ;;  %v606_v51 = vpop.f32.mrb[1].mxu1 }
 0x10b   : > { %v543_v52 = vpop.f32.mrb[2].mxu0  ;;  %v607_v53 = vpop.f32.mrb[2].mxu1 }
 0x10c   : > { %v544_v54 = vadd.f32 %v1397_v45, %v543_v52  ;;  %v608_v55 = vadd.f32 %v1397_v45, %v607_v53  ;;  %v545_v56 = vpop.f32.mrb[3].mxu0  ;;  %v609_v57 = vpop.f32.mrb[3].mxu1  ;;  %v667_v58 = vmax.f32 %v541_v48, 0.0  ;;  %v683_v59 = vmax.f32 %v605_v49, 0.0 }
 0x10e   : > { %v668_v60 = vmax.f32 %v544_v54, 0.0  ;;  %v684_v61 = vmax.f32 %v608_v55, 0.0 }
 0x110   : > { %v1056_v62 = vpack.c.bf16 %v668_v60, %v667_v58  ;;  %v1096_v63 = vpack.c.bf16 %v684_v61, %v683_v59 }
 0x111   : > { %v548_v0 = vpop.f32.mrb[4].mxu0  ;;  %v612_v1 = vpop.f32.mrb[4].mxu1 }
 0x112   : > { %1057 = vst [vmem:[%s1407_s23] sm:$0xff] %v1056_v62   ;;  %1140 = vst [vmem:[%s1407_s23 + $0x40] sm:$0xff] %v1096_v63   ;;  %v549_v2 = vadd.f32 %v1397_v45, %v548_v0  ;;  %v613_v3 = vadd.f32 %v1397_v45, %v612_v1  ;;  %v550_v4 = vpop.f32.mrb[5].mxu0  ;;  %v614_v5 = vpop.f32.mrb[5].mxu1 }
 0x113   : > { %v551_v6 = vpop.f32.mrb[6].mxu0  ;;  %v615_v7 = vpop.f32.mrb[6].mxu1 }
 0x114   : > { %v552_v8 = vadd.f32 %v1397_v45, %v551_v6  ;;  %v616_v9 = vadd.f32 %v1397_v45, %v615_v7  ;;  %v553_v10 = vpop.f32.mrb[7].mxu0  ;;  %v617_v11 = vpop.f32.mrb[7].mxu1  ;;  %v669_v12 = vmax.f32 %v549_v2, 0.0  ;;  %v685_v13 = vmax.f32 %v613_v3, 0.0 }
 0x116   : > { %v670_v14 = vmax.f32 %v552_v8, 0.0  ;;  %v686_v15 = vmax.f32 %v616_v9, 0.0 }
 0x118   : > { %v1061_v16 = vpack.c.bf16 %v670_v14, %v669_v12  ;;  %v1101_v17 = vpack.c.bf16 %v686_v15, %v685_v13 }
 0x119   : > { %v556_v18 = vpop.f32.mrb[8].mxu0  ;;  %v620_v19 = vpop.f32.mrb[8].mxu1 }
 0x11a   : > { %1133 = vst [vmem:[%s1407_s23 + $0x8] sm:$0xff] %v1061_v16   ;;  %1141 = vst [vmem:[%s1407_s23 + $0x48] sm:$0xff] %v1101_v17   ;;  %v557_v20 = vadd.f32 %v1397_v45, %v556_v18  ;;  %v621_v21 = vadd.f32 %v1397_v45, %v620_v19  ;;  %v558_v22 = vpop.f32.mrb[9].mxu0  ;;  %v622_v23 = vpop.f32.mrb[9].mxu1 }
 0x11b   : > { %v559_v24 = vpop.f32.mrb[10].mxu0  ;;  %v623_v25 = vpop.f32.mrb[10].mxu1 }
 0x11c   : > { %v560_v26 = vadd.f32 %v1397_v45, %v559_v24  ;;  %v624_v27 = vadd.f32 %v1397_v45, %v623_v25  ;;  %v561_v28 = vpop.f32.mrb[11].mxu0  ;;  %v625_v29 = vpop.f32.mrb[11].mxu1  ;;  %v671_v30 = vmax.f32 %v557_v20, 0.0  ;;  %v687_v31 = vmax.f32 %v621_v21, 0.0 }
 0x11e   : > { %v672_v32 = vmax.f32 %v560_v26, 0.0  ;;  %v688_v33 = vmax.f32 %v624_v27, 0.0 }
 0x120   : > { %v1066_v34 = vpack.c.bf16 %v672_v32, %v671_v30  ;;  %v1106_v35 = vpack.c.bf16 %v688_v33, %v687_v31 }
 0x121   : > { %v564_v36 = vpop.f32.mrb[12].mxu0  ;;  %v628_v37 = vpop.f32.mrb[12].mxu1 }
 0x122   : > { %1134 = vst [vmem:[%s1407_s23 + $0x10] sm:$0xff] %v1066_v34   ;;  %1142 = vst [vmem:[%s1407_s23 + $0x50] sm:$0xff] %v1106_v35   ;;  %v565_v38 = vadd.f32 %v1397_v45, %v564_v36  ;;  %v629_v39 = vadd.f32 %v1397_v45, %v628_v37  ;;  %v566_v40 = vpop.f32.mrb[13].mxu0  ;;  %v630_v41 = vpop.f32.mrb[13].mxu1 }
 0x123   : > { %v567_v42 = vpop.f32.mrb[14].mxu0  ;;  %v631_v43 = vpop.f32.mrb[14].mxu1 }
 0x124   : > { %v568_v44 = vadd.f32 %v1397_v45, %v567_v42  ;;  %v632_v46 = vadd.f32 %v1397_v45, %v631_v43  ;;  %v569_v47 = vpop.f32.mrb[15].mxu0  ;;  %v633_v48 = vpop.f32.mrb[15].mxu1  ;;  %v673_v49 = vmax.f32 %v565_v38, 0.0  ;;  %v689_v50 = vmax.f32 %v629_v39, 0.0 }
 0x126   : > { %v674_v51 = vmax.f32 %v568_v44, 0.0  ;;  %v690_v52 = vmax.f32 %v632_v46, 0.0 }
 0x128   : > { %v1071_v53 = vpack.c.bf16 %v674_v51, %v673_v49  ;;  %v1111_v54 = vpack.c.bf16 %v690_v52, %v689_v50 }
 0x129   : > { %v572_v55 = vpop.f32.mrb[16].mxu0  ;;  %v636_v56 = vpop.f32.mrb[16].mxu1 }
 0x12a   : > { %1135 = vst [vmem:[%s1407_s23 + $0x18] sm:$0xff] %v1071_v53   ;;  %1143 = vst [vmem:[%s1407_s23 + $0x58] sm:$0xff] %v1111_v54   ;;  %v573_v57 = vadd.f32 %v1397_v45, %v572_v55  ;;  %v637_v58 = vadd.f32 %v1397_v45, %v636_v56  ;;  %v574_v59 = vpop.f32.mrb[17].mxu0  ;;  %v638_v60 = vpop.f32.mrb[17].mxu1 }
 0x12b   : > { %v575_v61 = vpop.f32.mrb[18].mxu0  ;;  %v639_v62 = vpop.f32.mrb[18].mxu1 }
 0x12c   : > { %v576_v63 = vadd.f32 %v1397_v45, %v575_v61  ;;  %v640_v0 = vadd.f32 %v1397_v45, %v639_v62  ;;  %v577_v1 = vpop.f32.mrb[19].mxu0  ;;  %v641_v2 = vpop.f32.mrb[19].mxu1  ;;  %v675_v3 = vmax.f32 %v573_v57, 0.0  ;;  %v691_v4 = vmax.f32 %v637_v58, 0.0 }
 0x12e   : > { %v676_v5 = vmax.f32 %v576_v63, 0.0  ;;  %v692_v6 = vmax.f32 %v640_v0, 0.0 }
 0x130   : > { %v1076_v7 = vpack.c.bf16 %v676_v5, %v675_v3  ;;  %v1116_v8 = vpack.c.bf16 %v692_v6, %v691_v4 }
 0x131   : > { %v580_v9 = vpop.f32.mrb[20].mxu0  ;;  %v644_v10 = vpop.f32.mrb[20].mxu1 }
 0x132   : > { %1136 = vst [vmem:[%s1407_s23 + $0x20] sm:$0xff] %v1076_v7   ;;  %1144 = vst [vmem:[%s1407_s23 + $0x60] sm:$0xff] %v1116_v8   ;;  %v581_v11 = vadd.f32 %v1397_v45, %v580_v9  ;;  %v645_v12 = vadd.f32 %v1397_v45, %v644_v10  ;;  %v582_v13 = vpop.f32.mrb[21].mxu0  ;;  %v646_v14 = vpop.f32.mrb[21].mxu1 }
 0x133   : > { %v583_v15 = vpop.f32.mrb[22].mxu0  ;;  %v647_v16 = vpop.f32.mrb[22].mxu1 }
 0x134   : > { %v584_v17 = vadd.f32 %v1397_v45, %v583_v15  ;;  %v648_v18 = vadd.f32 %v1397_v45, %v647_v16  ;;  %v585_v19 = vpop.f32.mrb[23].mxu0  ;;  %v649_v20 = vpop.f32.mrb[23].mxu1  ;;  %v677_v21 = vmax.f32 %v581_v11, 0.0  ;;  %v693_v22 = vmax.f32 %v645_v12, 0.0 }
 0x136   : > { %v678_v23 = vmax.f32 %v584_v17, 0.0  ;;  %v694_v24 = vmax.f32 %v648_v18, 0.0 }
 0x138   : > { %v1081_v25 = vpack.c.bf16 %v678_v23, %v677_v21  ;;  %v1121_v26 = vpack.c.bf16 %v694_v24, %v693_v22 }
 0x139   : > { %v588_v27 = vpop.f32.mrb[24].mxu0  ;;  %v652_v28 = vpop.f32.mrb[24].mxu1 }
 0x13a   : > { %1137 = vst [vmem:[%s1407_s23 + $0x28] sm:$0xff] %v1081_v25   ;;  %1145 = vst [vmem:[%s1407_s23 + $0x68] sm:$0xff] %v1121_v26   ;;  %v589_v29 = vadd.f32 %v1397_v45, %v588_v27  ;;  %v653_v30 = vadd.f32 %v1397_v45, %v652_v28  ;;  %v590_v31 = vpop.f32.mrb[25].mxu0  ;;  %v654_v32 = vpop.f32.mrb[25].mxu1 }
 0x13b   : > { %v591_v33 = vpop.f32.mrb[26].mxu0  ;;  %v655_v34 = vpop.f32.mrb[26].mxu1 }
 0x13c   : > { %v592_v35 = vadd.f32 %v1397_v45, %v591_v33  ;;  %v656_v36 = vadd.f32 %v1397_v45, %v655_v34  ;;  %v593_v37 = vpop.f32.mrb[27].mxu0  ;;  %v657_v38 = vpop.f32.mrb[27].mxu1  ;;  %v679_v39 = vmax.f32 %v589_v29, 0.0  ;;  %v695_v40 = vmax.f32 %v653_v30, 0.0 }
 0x13e   : > { %v680_v41 = vmax.f32 %v592_v35, 0.0  ;;  %v696_v42 = vmax.f32 %v656_v36, 0.0 }
 0x140   : > { %v1086_v43 = vpack.c.bf16 %v680_v41, %v679_v39  ;;  %v1126_v44 = vpack.c.bf16 %v696_v42, %v695_v40 }
 0x141   : > { %v596_v46 = vpop.f32.mrb[28].mxu0  ;;  %v660_v47 = vpop.f32.mrb[28].mxu1 }
 0x142   : > { %1138 = vst [vmem:[%s1407_s23 + $0x30] sm:$0xff] %v1086_v43   ;;  %1146 = vst [vmem:[%s1407_s23 + $0x70] sm:$0xff] %v1126_v44   ;;  %v597_v48 = vadd.f32 %v1397_v45, %v596_v46  ;;  %v661_v49 = vadd.f32 %v1397_v45, %v660_v47  ;;  %v598_v50 = vpop.f32.mrb[29].mxu0  ;;  %v662_v51 = vpop.f32.mrb[29].mxu1 }
 0x143   : > { %v599_v52 = vpop.f32.mrb[30].mxu0  ;;  %v663_v53 = vpop.f32.mrb[30].mxu1 }
 0x144   : > { %v600_v54 = vadd.f32 %v1397_v45, %v599_v52  ;;  %v664_v55 = vadd.f32 %v1397_v45, %v663_v53  ;;  %v601_v56 = vpop.f32.mrb[31].mxu0  ;;  %v665_v57 = vpop.f32.mrb[31].mxu1  ;;  %v681_v58 = vmax.f32 %v597_v48, 0.0  ;;  %v697_v59 = vmax.f32 %v661_v49, 0.0 }
 0x146   : > { %v682_v60 = vmax.f32 %v600_v54, 0.0  ;;  %v698_v61 = vmax.f32 %v664_v55, 0.0 }
 0x148   : > { %v1091_v62 = vpack.c.bf16 %v682_v60, %v681_v58  ;;  %v1131_v63 = vpack.c.bf16 %v698_v61, %v697_v59 }
 0x14a   : > { %1139 = vst [vmem:[%s1407_s23 + $0x38] sm:$0xff] %v1091_v62   ;;  %1147 = vst [vmem:[%s1407_s23 + $0x78] sm:$0xff] %v1131_v63  }
 0x14b PF: > { %s13_s12 = sadd.s32 1, %s1247_s12  }
 0x14c   : > { %p10_p4 = scmp.ge.s32.totalorder %s13_s12, 4  }
 0x14e   :  { %12 = sbr.rel (!%p10_p4) target bundleno = 1 (0x1), region = 62 }

// kernel: critic_forward.5
= control target key start
LH: loop header
LB: loop body
LE: loop exit
PB: predicated region body
PF: predicated region fallthrough
CT: control target
= control target key end

     0   :  { %s3621_s1 = inlined_call_operand.vmem [shape: bf16[2048,128], index: 1, kind: input, shape index: {}]   ;;  %s3622_s0 = inlined_call_operand.vmem [shape: bf16[72,2048], index: 0, kind: input, shape index: {}]   ;;  %s3623_s2 = inlined_call_operand.vmem [shape: f32[1,128], index: 2, kind: input, shape index: {}]   ;;  %s3624_s3 = inlined_call_operand.vmem [shape: bf16[72,128], index: 3, kind: output, shape index: {}]  }
   0x1   :  { %v2747_v0 = vld [vmem:[%s3621_s1 + $0x40] sm:$0xff]   ;;  %v2751_v4 = vld [vmem:[%s3621_s1 + $0x48] sm:$0xff]   ;;  %v2755_v8 = vld [vmem:[%s3621_s1 + $0x50] sm:$0xff]  }
   0x2   :  { %v2748_v1 = vld [vmem:[%s3621_s1 + $0xc0] sm:$0xff]   ;;  %2379 = vmatprep.subr.bf16.mxu0 %v2747_v0  ;;  %v2752_v5 = vld [vmem:[%s3621_s1 + $0xc8] sm:$0xff]   ;;  %v2756_v9 = vld [vmem:[%s3621_s1 + $0xd0] sm:$0xff]  }
   0x3   :  { %v2749_v2 = vld [vmem:[%s3621_s1] sm:$0xff]   ;;  %2425 = vmatprep.subr.bf16.mxu1 %v2748_v1  ;;  %v2753_v6 = vld [vmem:[%s3621_s1 + $0x8] sm:$0xff]   ;;  %v2757_v10 = vld [vmem:[%s3621_s1 + $0x10] sm:$0xff]  }
   0x4   :  { %v2750_v3 = vld [vmem:[%s3621_s1 + $0x80] sm:$0xff]   ;;  %2380 = vmatpush3.bf16.msra.mxu0 %v2749_v2  ;;  %v2754_v7 = vld [vmem:[%s3621_s1 + $0x88] sm:$0xff]   ;;  %v2758_v11 = vld [vmem:[%s3621_s1 + $0x90] sm:$0xff]  }
   0x5   :  { %2426 = vmatpush3.bf16.msra.mxu1 %v2750_v3  ;;  %2381 = vmatprep.subr.bf16.mxu0 %v2751_v4  ;;  %v2759_v12 = vld [vmem:[%s3621_s1 + $0x58] sm:$0xff]   ;;  %v2763_v16 = vld [vmem:[%s3621_s1 + $0x60] sm:$0xff]   ;;  %v2767_v20 = vld [vmem:[%s3621_s1 + $0x68] sm:$0xff]  }
   0x6   :  { %2427 = vmatprep.subr.bf16.mxu1 %v2752_v5  ;;  %v2760_v13 = vld [vmem:[%s3621_s1 + $0xd8] sm:$0xff]   ;;  %v2764_v17 = vld [vmem:[%s3621_s1 + $0xe0] sm:$0xff]   ;;  %v2768_v21 = vld [vmem:[%s3621_s1 + $0xe8] sm:$0xff]  }
   0x7   :  { %v2761_v14 = vld [vmem:[%s3621_s1 + $0x18] sm:$0xff]   ;;  %v2765_v18 = vld [vmem:[%s3621_s1 + $0x20] sm:$0xff]   ;;  %v2769_v22 = vld [vmem:[%s3621_s1 + $0x28] sm:$0xff]  }
   0x8   :  { %2382 = vmatpush3.bf16.msra.mxu0 %v2753_v6  ;;  %v2762_v15 = vld [vmem:[%s3621_s1 + $0x98] sm:$0xff]   ;;  %v2766_v19 = vld [vmem:[%s3621_s1 + $0xa0] sm:$0xff]   ;;  %v2770_v23 = vld [vmem:[%s3621_s1 + $0xa8] sm:$0xff]  }
   0x9   :  { %2428 = vmatpush3.bf16.msra.mxu1 %v2754_v7  ;;  %2383 = vmatprep.subr.bf16.mxu0 %v2755_v8  ;;  %v2771_v24 = vld [vmem:[%s3621_s1 + $0x70] sm:$0xff]   ;;  %v2775_v28 = vld [vmem:[%s3621_s1 + $0x78] sm:$0xff]   ;;  %v15_v32 = vld [vmem:[%s3622_s0] sm:$0xff] }
   0xa   :  { %2429 = vmatprep.subr.bf16.mxu1 %v2756_v9  ;;  %v2772_v25 = vld [vmem:[%s3621_s1 + $0xf0] sm:$0xff]   ;;  %v2776_v29 = vld [vmem:[%s3621_s1 + $0xf8] sm:$0xff]   ;;  %v23_v33 = vld [vmem:[%s3622_s0 + $0x40] sm:$0xff] }
   0xb   :  { %v2773_v26 = vld [vmem:[%s3621_s1 + $0x30] sm:$0xff]   ;;  %v2777_v30 = vld [vmem:[%s3621_s1 + $0x38] sm:$0xff]   ;;  %v16_v34 = vld [vmem:[%s3622_s0 + $0x8] sm:$0xff]  ;;  %v2130_v35 = vcombine.low %v15_v32, %v23_v33  ;;  %v2131_v36 = vcombine.high %v15_v32, %v23_v33 }
   0xc   :  { %2384 = vmatpush3.bf16.msra.mxu0 %v2757_v10  ;;  %v2774_v27 = vld [vmem:[%s3621_s1 + $0xb0] sm:$0xff]   ;;  %v2778_v31 = vld [vmem:[%s3621_s1 + $0xb8] sm:$0xff]   ;;  %v24_v37 = vld [vmem:[%s3622_s0 + $0x48] sm:$0xff] }
   0xd   :  { %2430 = vmatpush3.bf16.msra.mxu1 %v2758_v11  ;;  %2385 = vmatprep.subr.bf16.mxu0 %v2759_v12  ;;  %v2132_v38 = vcombine.low %v16_v34, %v24_v37  ;;  %v2133_v39 = vcombine.high %v16_v34, %v24_v37  ;;  %v2779_v40 = vld [vmem:[%s3621_s1 + $0x140] sm:$0xff]   ;;  %v2783_v44 = vld [vmem:[%s3621_s1 + $0x148] sm:$0xff]   ;;  %v2787_v56 = vld [vmem:[%s3621_s1 + $0x150] sm:$0xff]  }
   0xe   :  { %2431 = vmatprep.subr.bf16.mxu1 %v2760_v13  ;;  %1526 = vmatprep.mubr.bf16.mxu0 %v2131_v36  ;;  %v2780_v41 = vld [vmem:[%s3621_s1 + $0x100] sm:$0xff]   ;;  %v2784_v45 = vld [vmem:[%s3621_s1 + $0x108] sm:$0xff]   ;;  %v2788_v57 = vld [vmem:[%s3621_s1 + $0x110] sm:$0xff]  }
   0xf   :  { %1598 = vmatprep.mubr.bf16.mxu1 %v2133_v39  ;;  %v2781_v42 = vld [vmem:[%s3621_s1 + $0x1c0] sm:$0xff]   ;;  %v32_v49 = vld [vmem:[%s3622_s0 + $0x88] sm:$0xff]  ;;  %v2789_v58 = vld [vmem:[%s3621_s1 + $0x1d0] sm:$0xff]  }
  0x10   :  { %2386 = vmatpush3.bf16.msra.mxu0 %v2761_v14  ;;  %v2782_v43 = vld [vmem:[%s3621_s1 + $0x180] sm:$0xff]   ;;  %v40_v50 = vld [vmem:[%s3622_s0 + $0xc8] sm:$0xff]  ;;  %v2790_v59 = vld [vmem:[%s3621_s1 + $0x190] sm:$0xff]  }
  0x11   :  { %2432 = vmatpush3.bf16.msra.mxu1 %v2762_v15  ;;  %2387 = vmatprep.subr.bf16.mxu0 %v2763_v16  ;;  %v31_v46 = vld [vmem:[%s3622_s0 + $0x80] sm:$0xff]  ;;  %v2149_v52 = vcombine.high %v32_v49, %v40_v50  ;;  %v2785_v53 = vld [vmem:[%s3621_s1 + $0x1c8] sm:$0xff]   ;;  %v2148_v54 = vcombine.low %v32_v49, %v40_v50  ;;  %v2791_v2 = vld [vmem:[%s3621_s1 + $0x158] sm:$0xff]  }
  0x12   :  { %2433 = vmatprep.subr.bf16.mxu1 %v2764_v17  ;;  %v39_v47 = vld [vmem:[%s3622_s0 + $0xc0] sm:$0xff]  ;;  %v2786_v55 = vld [vmem:[%s3621_s1 + $0x188] sm:$0xff]   ;;  %v2792_v5 = vld [vmem:[%s3621_s1 + $0x118] sm:$0xff]  }
  0x13   :  { %v2147_v48 = vcombine.high %v31_v46, %v39_v47  ;;  %v2146_v51 = vcombine.low %v31_v46, %v39_v47  ;;  %v47_v60 = vld [vmem:[%s3622_s0 + $0x100] sm:$0xff]  ;;  %v48_v62 = vld [vmem:[%s3622_s0 + $0x108] sm:$0xff]  ;;  %v2793_v6 = vld [vmem:[%s3621_s1 + $0x1d8] sm:$0xff]  }
  0x14   :  { %2388 = vmatpush3.bf16.msra.mxu0 %v2765_v18  ;;  %v55_v61 = vld [vmem:[%s3622_s0 + $0x140] sm:$0xff]  ;;  %v56_v63 = vld [vmem:[%s3622_s0 + $0x148] sm:$0xff]  ;;  %v2794_v7 = vld [vmem:[%s3621_s1 + $0x198] sm:$0xff]  }
  0x15   :  { %2434 = vmatpush3.bf16.msra.mxu1 %v2766_v19  ;;  %2389 = vmatprep.subr.bf16.mxu0 %v2767_v20  ;;  %v2163_v0 = vcombine.high %v47_v60, %v55_v61  ;;  %v2165_v1 = vcombine.high %v48_v62, %v56_v63  ;;  %v2162_v3 = vcombine.low %v47_v60, %v55_v61  ;;  %v2795_v8 = vld [vmem:[%s3621_s1 + $0x160] sm:$0xff]   ;;  %v64_v13 = vld [vmem:[%s3622_s0 + $0x188] sm:$0xff]  ;;  %v2810_v33 = vld [vmem:[%s3621_s1 + $0x1b0] sm:$0xff]  }
  0x16   :  { %2435 = vmatprep.subr.bf16.mxu1 %v2768_v21  ;;  %v2164_v4 = vcombine.low %v48_v62, %v56_v63  ;;  %v2796_v9 = vld [vmem:[%s3621_s1 + $0x120] sm:$0xff]   ;;  %v72_v15 = vld [vmem:[%s3622_s0 + $0x1c8] sm:$0xff]  ;;  %v2811_v34 = vld [vmem:[%s3621_s1 + $0x178] sm:$0xff]  }
  0x17   :  { %v2797_v10 = vld [vmem:[%s3621_s1 + $0x1e0] sm:$0xff]   ;;  %v2181_v17 = vcombine.high %v64_v13, %v72_v15  ;;  %v2180_v19 = vcombine.low %v64_v13, %v72_v15  ;;  %v2799_v20 = vld [vmem:[%s3621_s1 + $0x168] sm:$0xff]   ;;  %v2813_v36 = vld [vmem:[%s3621_s1 + $0x1f8] sm:$0xff]  }
  0x18   :  { %2390 = vmatpush3.bf16.msra.mxu0 %v2769_v22  ;;  %v63_v11 = vld [vmem:[%s3622_s0 + $0x180] sm:$0xff]  ;;  %v2800_v21 = vld [vmem:[%s3621_s1 + $0x128] sm:$0xff]   ;;  %v2814_v37 = vld [vmem:[%s3621_s1 + $0x1b8] sm:$0xff]  }
  0x19   :  { %2436 = vmatpush3.bf16.msra.mxu1 %v2770_v23  ;;  %2391 = vmatprep.subr.bf16.mxu0 %v2771_v24  ;;  %v71_v12 = vld [vmem:[%s3622_s0 + $0x1c0] sm:$0xff]  ;;  %v2801_v22 = vld [vmem:[%s3621_s1 + $0x1e8] sm:$0xff]   ;;  %v2803_v24 = vld [vmem:[%s3621_s1 + $0x170] sm:$0xff]  }
  0x1a   :  { %2437 = vmatprep.subr.bf16.mxu1 %v2772_v25  ;;  %v2179_v14 = vcombine.high %v63_v11, %v71_v12  ;;  %v2178_v16 = vcombine.low %v63_v11, %v71_v12  ;;  %v2798_v18 = vld [vmem:[%s3621_s1 + $0x1a0] sm:$0xff]   ;;  %v2802_v23 = vld [vmem:[%s3621_s1 + $0x1a8] sm:$0xff]   ;;  %v25_v39 = vld [vmem:[%s3622_s0 + $0x50] sm:$0xff] }
  0x1b   :  { %v79_v25 = vld [vmem:[%s3622_s0 + $0x200] sm:$0xff]  ;;  %v2819_v50 = vld [vmem:[%s3621_s1 + $0x248] sm:$0xff]   ;;  %v2823_v62 = vld [vmem:[%s3621_s1 + $0x250] sm:$0xff]  }
  0x1c   :  { %2392 = vmatpush3.bf16.msra.mxu0 %v2773_v26  ;;  %v80_v26 = vld [vmem:[%s3622_s0 + $0x208] sm:$0xff]  ;;  %v2816_v47 = vld [vmem:[%s3621_s1 + $0x200] sm:$0xff]   ;;  %v2824_v63 = vld [vmem:[%s3621_s1 + $0x210] sm:$0xff]  }
  0x1d   :  { %2438 = vmatpush3.bf16.msra.mxu1 %v2774_v27  ;;  %2393 = vmatprep.subr.bf16.mxu0 %v2775_v28  ;;  %v2195_v27 = vcombine.high %v79_v25, %v79_v25  ;;  %v2197_v28 = vcombine.high %v80_v26, %v80_v26  ;;  %v2196_v32 = vcombine.low %v80_v26, %v80_v26  ;;  %v2818_v49 = vld [vmem:[%s3621_s1 + $0x280] sm:$0xff]   ;;  %v2822_v60 = vld [vmem:[%s3621_s1 + $0x288] sm:$0xff]   ;;  %v2829_v11 = vld [vmem:[%s3621_s1 + $0x2d8] sm:$0xff]  }
  0x1e   :  { %2439 = vmatprep.subr.bf16.mxu1 %v2776_v29  ;;  %v2806_v29 = vld [vmem:[%s3621_s1 + $0x130] sm:$0xff]   ;;  %v2830_v13 = vld [vmem:[%s3621_s1 + $0x298] sm:$0xff]   ;;  %v2832_v15 = vld [vmem:[%s3621_s1 + $0x220] sm:$0xff]  }
  0x20   :  { %2394 = vmatpush3.bf16.msra.mxu0 %v2777_v30  ;;  %v2194_v30 = vcombine.low %v79_v25, %v79_v25  ;;  %v2835_v25 = vld [vmem:[%s3621_s1 + $0x268] sm:$0xff]  }
  0x21   :  { %2440 = vmatpush3.bf16.msra.mxu1 %v2778_v31  ;;  %2471 = vmatprep.subr.bf16.mxu0 %v2779_v40  ;;  %v2809_v31 = vld [vmem:[%s3621_s1 + $0x1f0] sm:$0xff]   ;;  %v18_v40 = vld [vmem:[%s3622_s0 + $0x18] sm:$0xff] }
  0x22   :  { %2517 = vmatprep.subr.bf16.mxu1 %v2781_v42  ;;  %v26_v42 = vld [vmem:[%s3622_s0 + $0x58] sm:$0xff] }
  0x23   :  { %1527 = vmatmul.mubr.bf16.vlgmr.msra.gmra.mrb[0].mxu0 %v2130_v35  ;;  %v2812_v35 = vld [vmem:[%s3621_s1 + $0x138] sm:$0xff]   ;;  %v2136_v46 = vcombine.low %v18_v40, %v26_v42 }
  0x24   :  { %1599 = vmatmul.mubr.bf16.vlgmr.msra.gmra.mrb[0].mxu1 %v2132_v38  ;;  %2472 = vmatpush3.bf16.msra.mxu0 %v2780_v41  ;;  %v17_v38 = vld [vmem:[%s3622_s0 + $0x10] sm:$0xff] }
  0x25   :  { %2518 = vmatpush3.bf16.msra.mxu1 %v2782_v43  ;;  %2473 = vmatprep.subr.bf16.mxu0 %v2783_v44  ;;  %v2135_v41 = vcombine.high %v17_v38, %v25_v39  ;;  %v2134_v43 = vcombine.low %v17_v38, %v25_v39  ;;  %v2137_v44 = vcombine.high %v18_v40, %v26_v42  ;;  %v2847_v39 = vld [vmem:[%s3621_s1 + $0x278] sm:$0xff]  }
  0x26   :  { %1534 = vmatprep.mubr.bf16.mxu0 %v2147_v48  ;;  %1606 = vmatprep.mubr.bf16.mxu1 %v2149_v52  ;;  %v2817_v48 = vld [vmem:[%s3621_s1 + $0x2c0] sm:$0xff]   ;;  %v33_v52 = vld [vmem:[%s3622_s0 + $0x90] sm:$0xff]  ;;  %v2849_v42 = vld [vmem:[%s3621_s1 + $0x2f8] sm:$0xff]  }
  0x27   :  { %2519 = vmatprep.subr.bf16.mxu1 %v2785_v53  ;;  %v41_v53 = vld [vmem:[%s3622_s0 + $0xd0] sm:$0xff] }
  0x28   :  { %2474 = vmatpush3.bf16.msra.mxu0 %v2784_v45  ;;  %v2815_v45 = vld [vmem:[%s3621_s1 + $0x240] sm:$0xff]  }
  0x29   :  { %2520 = vmatpush3.bf16.msra.mxu1 %v2786_v55  ;;  %2475 = vmatprep.subr.bf16.mxu0 %v2787_v56  ;;  %v34_v55 = vld [vmem:[%s3622_s0 + $0x98] sm:$0xff] }
  0x2a   :  { %2521 = vmatprep.subr.bf16.mxu1 %v2789_v58  ;;  %v42_v56 = vld [vmem:[%s3622_s0 + $0xd8] sm:$0xff]  ;;  %v2821_v58 = vld [vmem:[%s3621_s1 + $0x2c8] sm:$0xff]  }
  0x2b   :  { %1535 = vmatmul.mubr.bf16.gmra.mrb[4].mxu0 %v2146_v51  ;;  %v2820_v51 = vld [vmem:[%s3621_s1 + $0x208] sm:$0xff]   ;;  %v2152_v61 = vcombine.low %v34_v55, %v42_v56 }
  0x2c   :  { %1607 = vmatmul.mubr.bf16.gmra.mrb[4].mxu1 %v2148_v54  ;;  %2476 = vmatpush3.bf16.msra.mxu0 %v2788_v57  ;;  %v2151_v54 = vcombine.high %v33_v52, %v41_v53  ;;  %v2153_v57 = vcombine.high %v34_v55, %v42_v56  ;;  %v2854_v55 = vld [vmem:[%s3621_s1 + $0x380] sm:$0xff]   ;;  %v2855_v56 = vld [vmem:[%s3621_s1 + $0x348] sm:$0xff]  }
  0x2d   :  { %2522 = vmatpush3.bf16.msra.mxu1 %v2790_v59  ;;  %1542 = vmatprep.mubr.bf16.mxu0 %v2163_v0  ;;  %v2150_v59 = vcombine.low %v33_v52, %v41_v53  ;;  %v2825_v0 = vld [vmem:[%s3621_s1 + $0x2d0] sm:$0xff]   ;;  %v2853_v53 = vld [vmem:[%s3621_s1 + $0x3c0] sm:$0xff]  }
  0x2e   :  { %1614 = vmatprep.mubr.bf16.mxu1 %v2165_v1  ;;  %2477 = vmatprep.subr.bf16.mxu0 %v2791_v2  ;;  %v2826_v1 = vld [vmem:[%s3621_s1 + $0x290] sm:$0xff]  }
  0x2f   :  { %2523 = vmatprep.subr.bf16.mxu1 %v2793_v6  ;;  %v49_v2 = vld [vmem:[%s3622_s0 + $0x110] sm:$0xff] }
  0x30   :  { %2478 = vmatpush3.bf16.msra.mxu0 %v2792_v5  ;;  %v58_v5 = vld [vmem:[%s3622_s0 + $0x158] sm:$0xff] }
  0x31   :  { %2524 = vmatpush3.bf16.msra.mxu1 %v2794_v7  ;;  %2479 = vmatprep.subr.bf16.mxu0 %v2795_v8  ;;  %v2827_v8 = vld [vmem:[%s3621_s1 + $0x258] sm:$0xff]  }
  0x32   :  { %2525 = vmatprep.subr.bf16.mxu1 %v2797_v10 }
  0x33   :  { %1543 = vmatmul.mubr.bf16.gmra.mrb[8].mxu0 %v2162_v3  ;;  %v57_v3 = vld [vmem:[%s3622_s0 + $0x150] sm:$0xff] }
  0x34   :  { %1615 = vmatmul.mubr.bf16.gmra.mrb[8].mxu1 %v2164_v4  ;;  %2480 = vmatpush3.bf16.msra.mxu0 %v2796_v9  ;;  %v50_v4 = vld [vmem:[%s3622_s0 + $0x118] sm:$0xff]  ;;  %v2167_v6 = vcombine.high %v49_v2, %v57_v3  ;;  %v2166_v10 = vcombine.low %v49_v2, %v57_v3  ;;  %v2859_v2 = vld [vmem:[%s3621_s1 + $0x350] sm:$0xff]  }
  0x35   :  { %1550 = vmatprep.mubr.bf16.mxu0 %v2179_v14  ;;  %1622 = vmatprep.mubr.bf16.mxu1 %v2181_v17  ;;  %v2169_v7 = vcombine.high %v50_v4, %v58_v5  ;;  %v2828_v9 = vld [vmem:[%s3621_s1 + $0x218] sm:$0xff]   ;;  %v2168_v12 = vcombine.low %v50_v4, %v58_v5  ;;  %v2831_v14 = vld [vmem:[%s3621_s1 + $0x260] sm:$0xff]   ;;  %v65_v17 = vld [vmem:[%s3622_s0 + $0x190] sm:$0xff] }
  0x36   :  { %2526 = vmatpush3.bf16.msra.mxu1 %v2798_v18  ;;  %2481 = vmatprep.subr.bf16.mxu0 %v2799_v20  ;;  %v73_v18 = vld [vmem:[%s3622_s0 + $0x1d0] sm:$0xff] }
  0x37   :  { %2527 = vmatprep.subr.bf16.mxu1 %v2801_v22  ;;  %v2183_v20 = vcombine.high %v65_v17, %v73_v18  ;;  %v2860_v4 = vld [vmem:[%s3621_s1 + $0x310] sm:$0xff]  }
  0x38   :  { %2482 = vmatpush3.bf16.msra.mxu0 %v2800_v21  ;;  %v74_v21 = vld [vmem:[%s3622_s0 + $0x1d8] sm:$0xff] }
  0x39   :  { %2483 = vmatprep.subr.bf16.mxu0 %v2803_v24  ;;  %v2182_v24 = vcombine.low %v65_v17, %v73_v18  ;;  %v2866_v17 = vld [vmem:[%s3621_s1 + $0x398] sm:$0xff]  }
  0x3a   :  { %2528 = vmatpush3.bf16.msra.mxu1 %v2802_v23  ;;  %v2834_v23 = vld [vmem:[%s3621_s1 + $0x2a0] sm:$0xff]  }
  0x3b   :  { %1551 = vmatmul.mubr.bf16.gmra.mrb[12].mxu0 %v2178_v16  ;;  %2529 = vmatprep.subr.bf16.mxu1 %v2809_v31  ;;  %v2833_v16 = vld [vmem:[%s3621_s1 + $0x2e0] sm:$0xff]   ;;  %v81_v31 = vld [vmem:[%s3622_s0 + $0x210] sm:$0xff] }
  0x3c   :  { %1623 = vmatmul.mubr.bf16.gmra.mrb[12].mxu1 %v2180_v19  ;;  %1558 = vmatprep.mubr.bf16.mxu0 %v2195_v27  ;;  %v66_v19 = vld [vmem:[%s3622_s0 + $0x198] sm:$0xff]  ;;  %v2836_v27 = vld [vmem:[%s3621_s1 + $0x228] sm:$0xff]   ;;  %v2198_v38 = vcombine.low %v81_v31, %v81_v31 }
  0x3d   :  { %1630 = vmatprep.mubr.bf16.mxu1 %v2197_v28  ;;  %2484 = vmatpush3.bf16.msra.mxu0 %v2806_v29  ;;  %v2185_v22 = vcombine.high %v66_v19, %v74_v21  ;;  %v2184_v26 = vcombine.low %v66_v19, %v74_v21  ;;  %v2837_v28 = vld [vmem:[%s3621_s1 + $0x2e8] sm:$0xff]   ;;  %v2867_v19 = vld [vmem:[%s3621_s1 + $0x360] sm:$0xff]  }
  0x3e   :  { %2530 = vmatpush3.bf16.msra.mxu1 %v2810_v33  ;;  %2485 = vmatprep.subr.bf16.mxu0 %v2811_v34  ;;  %v2838_v29 = vld [vmem:[%s3621_s1 + $0x2a8] sm:$0xff]   ;;  %v2199_v33 = vcombine.high %v81_v31, %v81_v31  ;;  %v2868_v21 = vld [vmem:[%s3621_s1 + $0x320] sm:$0xff]  }
  0x3f   :  { %2531 = vmatprep.subr.bf16.mxu1 %v2813_v36  ;;  %v2845_v36 = vld [vmem:[%s3621_s1 + $0x2f0] sm:$0xff]   ;;  %v2872_v31 = vld [vmem:[%s3621_s1 + $0x328] sm:$0xff]  }
  0x41   :  { %2486 = vmatpush3.bf16.msra.mxu0 %v2812_v35  ;;  %v2842_v35 = vld [vmem:[%s3621_s1 + $0x230] sm:$0xff]  }
  0x42   :  { %2532 = vmatpush3.bf16.msra.mxu1 %v2814_v37  ;;  %2563 = vmatprep.subr.bf16.mxu0 %v2815_v45  ;;  %v2846_v37 = vld [vmem:[%s3621_s1 + $0x2b0] sm:$0xff]   ;;  %v27_v45 = vld [vmem:[%s3622_s0 + $0x60] sm:$0xff] }
  0x43   :  { %1559 = vmatmul.mubr.bf16.gmra.mrb[16].mxu0 %v2194_v30  ;;  %2609 = vmatprep.subr.bf16.mxu1 %v2817_v48  ;;  %v2839_v30 = vld [vmem:[%s3621_s1 + $0x270] sm:$0xff]   ;;  %v28_v48 = vld [vmem:[%s3622_s0 + $0x68] sm:$0xff] }
  0x44   :  { %1631 = vmatmul.mubr.bf16.gmra.mrb[16].mxu1 %v2196_v32  ;;  %1670 = vmatprep.mubr.bf16.mxu0 %v2135_v41  ;;  %v82_v32 = vld [vmem:[%s3622_s0 + $0x218] sm:$0xff] }
  0x45   :  { %1742 = vmatprep.mubr.bf16.mxu1 %v2137_v44  ;;  %v2201_v34 = vcombine.high %v82_v32, %v82_v32  ;;  %v2200_v40 = vcombine.low %v82_v32, %v82_v32  ;;  %v2848_v41 = vld [vmem:[%s3621_s1 + $0x238] sm:$0xff]   ;;  %v19_v44 = vld [vmem:[%s3622_s0 + $0x20] sm:$0xff] }
  0x46   :  { %v2138_v52 = vcombine.low %v19_v44, %v27_v45 }
  0x4b   :  { %1671 = vmatmul.mubr.bf16.vlgmr.msra.gmra.mrb[20].mxu0 %v2134_v43  ;;  %v2850_v43 = vld [vmem:[%s3621_s1 + $0x2b8] sm:$0xff]  }
  0x4c   :  { %1743 = vmatmul.mubr.bf16.vlgmr.msra.gmra.mrb[20].mxu1 %v2136_v46  ;;  %2564 = vmatpush3.bf16.msra.mxu0 %v2816_v47  ;;  %v20_v46 = vld [vmem:[%s3622_s0 + $0x28] sm:$0xff]  ;;  %v2139_v47 = vcombine.high %v19_v44, %v27_v45  ;;  %v2883_v44 = vld [vmem:[%s3621_s1 + $0x378] sm:$0xff]  }
  0x4d   :  { %2610 = vmatpush3.bf16.msra.mxu1 %v2818_v49  ;;  %2565 = vmatprep.subr.bf16.mxu0 %v2819_v50  ;;  %v2141_v49 = vcombine.high %v20_v46, %v28_v48  ;;  %v2851_v50 = vld [vmem:[%s3621_s1 + $0x340] sm:$0xff]   ;;  %v2884_v45 = vld [vmem:[%s3621_s1 + $0x338] sm:$0xff]  }
  0x4e   :  { %1678 = vmatprep.mubr.bf16.mxu0 %v2151_v54  ;;  %1750 = vmatprep.mubr.bf16.mxu1 %v2153_v57  ;;  %v2140_v54 = vcombine.low %v20_v46, %v28_v48  ;;  %v2856_v57 = vld [vmem:[%s3621_s1 + $0x308] sm:$0xff]  }
  0x4f   :  { %2611 = vmatprep.subr.bf16.mxu1 %v2821_v58  ;;  %v35_v58 = vld [vmem:[%s3622_s0 + $0xa0] sm:$0xff] }
  0x50   :  { %2566 = vmatpush3.bf16.msra.mxu0 %v2820_v51  ;;  %v2852_v51 = vld [vmem:[%s3621_s1 + $0x300] sm:$0xff]  }
  0x51   :  { %2612 = vmatpush3.bf16.msra.mxu1 %v2822_v60  ;;  %2567 = vmatprep.subr.bf16.mxu0 %v2823_v62  ;;  %v44_v62 = vld [vmem:[%s3622_s0 + $0xe8] sm:$0xff] }
  0x52   :  { %2613 = vmatprep.subr.bf16.mxu1 %v2825_v0  ;;  %v2857_v0 = vld [vmem:[%s3621_s1 + $0x3c8] sm:$0xff]  }
  0x53   :  { %1679 = vmatmul.mubr.bf16.gmra.mrb[24].mxu0 %v2150_v59  ;;  %v43_v59 = vld [vmem:[%s3622_s0 + $0xe0] sm:$0xff] }
  0x54   :  { %1751 = vmatmul.mubr.bf16.gmra.mrb[24].mxu1 %v2152_v61  ;;  %2568 = vmatpush3.bf16.msra.mxu0 %v2824_v63  ;;  %v2155_v60 = vcombine.high %v35_v58, %v43_v59  ;;  %v36_v61 = vld [vmem:[%s3622_s0 + $0xa8] sm:$0xff]  ;;  %v2154_v3 = vcombine.low %v35_v58, %v43_v59  ;;  %v38_v58 = vld [vmem:[%s3622_s0 + $0xb8] sm:$0xff] }
  0x55   :  { %2614 = vmatpush3.bf16.msra.mxu1 %v2826_v1  ;;  %1686 = vmatprep.mubr.bf16.mxu0 %v2167_v6  ;;  %v2157_v63 = vcombine.high %v36_v61, %v44_v62  ;;  %v2858_v1 = vld [vmem:[%s3621_s1 + $0x388] sm:$0xff]   ;;  %v2156_v5 = vcombine.low %v36_v61, %v44_v62  ;;  %v2861_v6 = vld [vmem:[%s3621_s1 + $0x3d0] sm:$0xff]   ;;  %v46_v59 = vld [vmem:[%s3622_s0 + $0xf8] sm:$0xff] }
  0x56   :  { %1758 = vmatprep.mubr.bf16.mxu1 %v2169_v7  ;;  %2569 = vmatprep.subr.bf16.mxu0 %v2827_v8  ;;  %v2862_v7 = vld [vmem:[%s3621_s1 + $0x390] sm:$0xff]   ;;  %v51_v8 = vld [vmem:[%s3622_s0 + $0x120] sm:$0xff] }
  0x57   :  { %2615 = vmatprep.subr.bf16.mxu1 %v2829_v11  ;;  %v60_v11 = vld [vmem:[%s3622_s0 + $0x168] sm:$0xff] }
  0x58   :  { %2570 = vmatpush3.bf16.msra.mxu0 %v2828_v9  ;;  %v59_v9 = vld [vmem:[%s3622_s0 + $0x160] sm:$0xff] }
  0x59   :  { %2616 = vmatpush3.bf16.msra.mxu1 %v2830_v13  ;;  %2571 = vmatprep.subr.bf16.mxu0 %v2831_v14  ;;  %v2863_v14 = vld [vmem:[%s3621_s1 + $0x358] sm:$0xff]   ;;  %v2170_v18 = vcombine.low %v51_v8, %v59_v9 }
  0x5a   :  { %2617 = vmatprep.subr.bf16.mxu1 %v2833_v16  ;;  %v2865_v16 = vld [vmem:[%s3621_s1 + $0x3d8] sm:$0xff]  }
  0x5b   :  { %1687 = vmatmul.mubr.bf16.gmra.mrb[28].mxu0 %v2166_v10  ;;  %v52_v10 = vld [vmem:[%s3622_s0 + $0x128] sm:$0xff] }
  0x5c   :  { %1759 = vmatmul.mubr.bf16.gmra.mrb[28].mxu1 %v2168_v12  ;;  %2572 = vmatpush3.bf16.msra.mxu0 %v2832_v15  ;;  %v2171_v12 = vcombine.high %v51_v8, %v59_v9  ;;  %v2173_v13 = vcombine.high %v52_v10, %v60_v11  ;;  %v2864_v15 = vld [vmem:[%s3621_s1 + $0x318] sm:$0xff]   ;;  %v69_v8 = vld [vmem:[%s3622_s0 + $0x1b0] sm:$0xff] }
  0x5d   :  { %1694 = vmatprep.mubr.bf16.mxu0 %v2183_v20  ;;  %1766 = vmatprep.mubr.bf16.mxu1 %v2185_v22  ;;  %v2172_v20 = vcombine.low %v52_v10, %v60_v11  ;;  %v2869_v22 = vld [vmem:[%s3621_s1 + $0x3e0] sm:$0xff]   ;;  %v77_v9 = vld [vmem:[%s3622_s0 + $0x1f0] sm:$0xff]  ;;  %v70_v10 = vld [vmem:[%s3622_s0 + $0x1b8] sm:$0xff] }
  0x5e   :  { %2618 = vmatpush3.bf16.msra.mxu1 %v2834_v23  ;;  %2573 = vmatprep.subr.bf16.mxu0 %v2835_v25  ;;  %v67_v23 = vld [vmem:[%s3622_s0 + $0x1a0] sm:$0xff]  ;;  %v68_v25 = vld [vmem:[%s3622_s0 + $0x1a8] sm:$0xff]  ;;  %v78_v11 = vld [vmem:[%s3622_s0 + $0x1f8] sm:$0xff] }
  0x5f   :  { %2619 = vmatprep.subr.bf16.mxu1 %v2837_v28 }
  0x60   :  { %2574 = vmatpush3.bf16.msra.mxu0 %v2836_v27  ;;  %v76_v27 = vld [vmem:[%s3622_s0 + $0x1e8] sm:$0xff] }
  0x61   :  { %2575 = vmatprep.subr.bf16.mxu0 %v2839_v30  ;;  %v2189_v28 = vcombine.high %v68_v25, %v76_v27  ;;  %v2871_v30 = vld [vmem:[%s3621_s1 + $0x368] sm:$0xff]  }
  0x62   :  { %2620 = vmatpush3.bf16.msra.mxu1 %v2838_v29  ;;  %v2870_v29 = vld [vmem:[%s3621_s1 + $0x3a0] sm:$0xff]  }
  0x63   :  { %1695 = vmatmul.mubr.bf16.gmra.mrb[32].mxu0 %v2182_v24  ;;  %2621 = vmatprep.subr.bf16.mxu1 %v2845_v36  ;;  %v75_v24 = vld [vmem:[%s3622_s0 + $0x1e0] sm:$0xff]  ;;  %v2875_v36 = vld [vmem:[%s3621_s1 + $0x370] sm:$0xff]  }
  0x64   :  { %1767 = vmatmul.mubr.bf16.gmra.mrb[32].mxu1 %v2184_v26  ;;  %1702 = vmatprep.mubr.bf16.mxu0 %v2199_v33  ;;  %v2187_v26 = vcombine.high %v67_v23, %v75_v24  ;;  %v2186_v32 = vcombine.low %v67_v23, %v75_v24  ;;  %v2873_v33 = vld [vmem:[%s3621_s1 + $0x3e8] sm:$0xff]  }
  0x65   :  { %1774 = vmatprep.mubr.bf16.mxu1 %v2201_v34  ;;  %2576 = vmatpush3.bf16.msra.mxu0 %v2842_v35  ;;  %v2188_v34 = vcombine.low %v68_v25, %v76_v27  ;;  %v2874_v35 = vld [vmem:[%s3621_s1 + $0x3a8] sm:$0xff]  }
  0x66   :  { %2622 = vmatpush3.bf16.msra.mxu1 %v2846_v37  ;;  %2577 = vmatprep.subr.bf16.mxu0 %v2847_v39  ;;  %v83_v37 = vld [vmem:[%s3622_s0 + $0x220] sm:$0xff] }
  0x67   :  { %2623 = vmatprep.subr.bf16.mxu1 %v2849_v42  ;;  %v2203_v39 = vcombine.high %v83_v37, %v83_v37  ;;  %v2881_v42 = vld [vmem:[%s3621_s1 + $0x3f0] sm:$0xff]   ;;  %v2202_v46 = vcombine.low %v83_v37, %v83_v37 }
  0x69   :  { %2578 = vmatpush3.bf16.msra.mxu0 %v2848_v41  ;;  %v2878_v41 = vld [vmem:[%s3621_s1 + $0x330] sm:$0xff]  }
  0x6a   :  { %2624 = vmatpush3.bf16.msra.mxu1 %v2850_v43  ;;  %2655 = vmatprep.subr.bf16.mxu0 %v2851_v50  ;;  %v2882_v43 = vld [vmem:[%s3621_s1 + $0x3b0] sm:$0xff]  }
  0x6b   :  { %1703 = vmatmul.mubr.bf16.gmra.mrb[36].mxu0 %v2198_v38  ;;  %2701 = vmatprep.subr.bf16.mxu1 %v2853_v53  ;;  %v84_v38 = vld [vmem:[%s3622_s0 + $0x228] sm:$0xff]  ;;  %v21_v50 = vld [vmem:[%s3622_s0 + $0x30] sm:$0xff] }
  0x6c   :  { %1775 = vmatmul.mubr.bf16.gmra.mrb[36].mxu1 %v2200_v40  ;;  %1814 = vmatprep.mubr.bf16.mxu0 %v2139_v47  ;;  %v2205_v40 = vcombine.high %v84_v38, %v84_v38  ;;  %v2885_v47 = vld [vmem:[%s3621_s1 + $0x3f8] sm:$0xff]   ;;  %v2204_v48 = vcombine.low %v84_v38, %v84_v38 }
  0x6d   :  { %1886 = vmatprep.mubr.bf16.mxu1 %v2141_v49  ;;  %v2886_v49 = vld [vmem:[%s3621_s1 + $0x3b8] sm:$0xff]  }
  0x73   :  { %1815 = vmatmul.mubr.bf16.vlgmr.msra.gmra.mrb[40].mxu0 %v2138_v52  ;;  %v22_v52 = vld [vmem:[%s3622_s0 + $0x38] sm:$0xff] }
  0x74   :  { %1887 = vmatmul.mubr.bf16.vlgmr.msra.gmra.mrb[40].mxu1 %v2140_v54  ;;  %2656 = vmatpush3.bf16.msra.mxu0 %v2852_v51  ;;  %v29_v51 = vld [vmem:[%s3622_s0 + $0x70] sm:$0xff]  ;;  %v30_v54 = vld [vmem:[%s3622_s0 + $0x78] sm:$0xff] }
  0x75   :  { %2702 = vmatpush3.bf16.msra.mxu1 %v2854_v55  ;;  %2657 = vmatprep.subr.bf16.mxu0 %v2855_v56  ;;  %v2143_v53 = vcombine.high %v21_v50, %v29_v51  ;;  %v2145_v55 = vcombine.high %v22_v52, %v30_v54  ;;  %v37_v56 = vld [vmem:[%s3622_s0 + $0xb0] sm:$0xff]  ;;  %v2144_v61 = vcombine.low %v22_v52, %v30_v54 }
  0x76   :  { %1822 = vmatprep.mubr.bf16.mxu0 %v2155_v60  ;;  %1894 = vmatprep.mubr.bf16.mxu1 %v2157_v63  ;;  %v2142_v60 = vcombine.low %v21_v50, %v29_v51  ;;  %v2161_v63 = vcombine.high %v38_v58, %v46_v59 }
  0x77   :  { %2703 = vmatprep.subr.bf16.mxu1 %v2857_v0  ;;  %v53_v0 = vld [vmem:[%s3622_s0 + $0x130] sm:$0xff] }
  0x78   :  { %2658 = vmatpush3.bf16.msra.mxu0 %v2856_v57  ;;  %v45_v57 = vld [vmem:[%s3622_s0 + $0xf0] sm:$0xff] }
  0x79   :  { %2704 = vmatpush3.bf16.msra.mxu1 %v2858_v1  ;;  %2659 = vmatprep.subr.bf16.mxu0 %v2859_v2  ;;  %v2159_v62 = vcombine.high %v37_v56, %v45_v57  ;;  %v61_v1 = vld [vmem:[%s3622_s0 + $0x170] sm:$0xff]  ;;  %v54_v2 = vld [vmem:[%s3622_s0 + $0x138] sm:$0xff] }
  0x7a   :  { %2705 = vmatprep.subr.bf16.mxu1 %v2861_v6  ;;  %v2175_v6 = vcombine.high %v53_v0, %v61_v1 }
  0x7b   :  { %1823 = vmatmul.mubr.bf16.gmra.mrb[44].mxu0 %v2154_v3  ;;  %v62_v3 = vld [vmem:[%s3622_s0 + $0x178] sm:$0xff] }
  0x7c   :  { %1895 = vmatmul.mubr.bf16.gmra.mrb[44].mxu1 %v2156_v5  ;;  %2660 = vmatpush3.bf16.msra.mxu0 %v2860_v4  ;;  %v2158_v4 = vcombine.low %v37_v56, %v45_v57  ;;  %v2160_v5 = vcombine.low %v38_v58, %v46_v59 }
  0x7d   :  { %2706 = vmatpush3.bf16.msra.mxu1 %v2862_v7  ;;  %1830 = vmatprep.mubr.bf16.mxu0 %v2171_v12  ;;  %v2177_v7 = vcombine.high %v54_v2, %v62_v3  ;;  %v2174_v12 = vcombine.low %v53_v0, %v61_v1 }
  0x7e   :  { %1902 = vmatprep.mubr.bf16.mxu1 %v2173_v13  ;;  %2661 = vmatprep.subr.bf16.mxu0 %v2863_v14  ;;  %v2176_v13 = vcombine.low %v54_v2, %v62_v3  ;;  %v2191_v14 = vcombine.high %v69_v8, %v77_v9 }
  0x7f   :  { %2707 = vmatprep.subr.bf16.mxu1 %v2865_v16  ;;  %v85_v16 = vld [vmem:[%s3622_s0 + $0x230] sm:$0xff] }
  0x80   :  { %2662 = vmatpush3.bf16.msra.mxu0 %v2864_v15  ;;  %v2193_v15 = vcombine.high %v70_v10, %v78_v11 }
  0x81   :  { %2708 = vmatpush3.bf16.msra.mxu1 %v2866_v17  ;;  %2663 = vmatprep.subr.bf16.mxu0 %v2867_v19  ;;  %v86_v17 = vld [vmem:[%s3622_s0 + $0x238] sm:$0xff]  ;;  %v2192_v19 = vcombine.low %v70_v10, %v78_v11 }
  0x82   :  { %2709 = vmatprep.subr.bf16.mxu1 %v2869_v22  ;;  %v2206_v22 = vcombine.low %v85_v16, %v85_v16  ;;  %v2208_v23 = vcombine.low %v86_v17, %v86_v17 }
  0x83   :  { %1831 = vmatmul.mubr.bf16.gmra.mrb[48].mxu0 %v2170_v18  ;;  %v2190_v18 = vcombine.low %v69_v8, %v77_v9 }
  0x84   :  { %1903 = vmatmul.mubr.bf16.gmra.mrb[48].mxu1 %v2172_v20  ;;  %2664 = vmatpush3.bf16.msra.mxu0 %v2868_v21  ;;  %v2207_v20 = vcombine.high %v85_v16, %v85_v16  ;;  %v2209_v21 = vcombine.high %v86_v17, %v86_v17 }
  0x85   :  { %1838 = vmatprep.mubr.bf16.mxu0 %v2187_v26  ;;  %1910 = vmatprep.mubr.bf16.mxu1 %v2189_v28  ;;  %v3514_v26 = vld [vmem:[%s3623_s2] ss:$0 sm:$0xff] }
  0x86   :  { %2710 = vmatpush3.bf16.msra.mxu1 %v2870_v29  ;;  %2665 = vmatprep.subr.bf16.mxu0 %v2871_v30 }
  0x87   :  { %2711 = vmatprep.subr.bf16.mxu1 %v2873_v33 }
  0x88   :  { %2666 = vmatpush3.bf16.msra.mxu0 %v2872_v31 }
  0x89   :  { %2667 = vmatprep.subr.bf16.mxu0 %v2875_v36 }
  0x8a   :  { %2712 = vmatpush3.bf16.msra.mxu1 %v2874_v35 }
  0x8b   :  { %1839 = vmatmul.mubr.bf16.gmra.mrb[52].mxu0 %v2186_v32  ;;  %2713 = vmatprep.subr.bf16.mxu1 %v2881_v42 }
  0x8c   :  { %1911 = vmatmul.mubr.bf16.gmra.mrb[52].mxu1 %v2188_v34  ;;  %1846 = vmatprep.mubr.bf16.mxu0 %v2203_v39 }
  0x8d   :  { %1918 = vmatprep.mubr.bf16.mxu1 %v2205_v40  ;;  %2668 = vmatpush3.bf16.msra.mxu0 %v2878_v41 }
  0x8e   :  { %2714 = vmatpush3.bf16.msra.mxu1 %v2882_v43  ;;  %2669 = vmatprep.subr.bf16.mxu0 %v2883_v44 }
  0x8f   :  { %2715 = vmatprep.subr.bf16.mxu1 %v2885_v47 }
  0x91   :  { %2670 = vmatpush3.bf16.msra.mxu0 %v2884_v45 }
  0x92   :  { %2716 = vmatpush3.bf16.msra.mxu1 %v2886_v49 }
  0x93   :  { %1847 = vmatmul.mubr.bf16.gmra.mrb[56].mxu0 %v2202_v46 }
  0x94   :  { %1919 = vmatmul.mubr.bf16.gmra.mrb[56].mxu1 %v2204_v48  ;;  %1958 = vmatprep.mubr.bf16.mxu0 %v2143_v53 }
  0x95   :  { %2030 = vmatprep.mubr.bf16.mxu1 %v2145_v55 }
  0x9b   :  { %1959 = vmatmul.mubr.bf16.vlgmr.msra.gmra.mrb[60].mxu0 %v2142_v60 }
  0x9c   :  { %2031 = vmatmul.mubr.bf16.vlgmr.msra.gmra.mrb[60].mxu1 %v2144_v61  ;;  %1966 = vmatprep.mubr.bf16.mxu0 %v2159_v62 }
  0x9d   :  { %2038 = vmatprep.mubr.bf16.mxu1 %v2161_v63 }
  0xa3   :  { %1967 = vmatmul.mubr.bf16.gmra.mrb[64].mxu0 %v2158_v4 }
  0xa4   :  { %2039 = vmatmul.mubr.bf16.gmra.mrb[64].mxu1 %v2160_v5  ;;  %1974 = vmatprep.mubr.bf16.mxu0 %v2175_v6 }
  0xa5   :  { %2046 = vmatprep.mubr.bf16.mxu1 %v2177_v7 }
  0xab   :  { %1975 = vmatmul.mubr.bf16.gmra.mrb[68].mxu0 %v2174_v12 }
  0xac   :  { %2047 = vmatmul.mubr.bf16.gmra.mrb[68].mxu1 %v2176_v13  ;;  %1982 = vmatprep.mubr.bf16.mxu0 %v2191_v14 }
  0xad   :  { %2054 = vmatprep.mubr.bf16.mxu1 %v2193_v15 }
  0xb3   :  { %1983 = vmatmul.mubr.bf16.gmra.mrb[72].mxu0 %v2190_v18 }
  0xb4   :  { %2055 = vmatmul.mubr.bf16.gmra.mrb[72].mxu1 %v2192_v19  ;;  %1990 = vmatprep.mubr.bf16.mxu0 %v2207_v20 }
  0xb5   :  { %2062 = vmatprep.mubr.bf16.mxu1 %v2209_v21 }
  0xbb   :  { %1991 = vmatmul.mubr.bf16.gmra.mrb[76].mxu0 %v2206_v22 }
  0xbc   :  { %2063 = vmatmul.mubr.bf16.gmra.mrb[76].mxu1 %v2208_v23 }
  0xf6   :  { %v2395_v24 = vpop.f32.mrb[0].mxu0 }
  0xf7   :  { %v2441_v25 = vpop.f32.mrb[0].mxu1  ;;  %v2396_v27 = vpop.f32.mrb[1].mxu0 }
  0xf8   :  { %v2397_v28 = vadd.f32 %v2396_v27, %v2395_v24  ;;  %v2442_v29 = vpop.f32.mrb[1].mxu1  ;;  %v2398_v30 = vpop.f32.mrb[2].mxu0 }
  0xf9   :  { %v2443_v31 = vadd.f32 %v2442_v29, %v2441_v25  ;;  %v2444_v32 = vpop.f32.mrb[2].mxu1  ;;  %v2399_v33 = vpop.f32.mrb[3].mxu0 }
  0xfa   :  { %v1529_v34 = vadd.f32 %v2397_v28, %v3514_v26  ;;  %v2400_v35 = vadd.f32 %v2399_v33, %v2398_v30  ;;  %v2445_v36 = vpop.f32.mrb[3].mxu1 }
  0xfb   :  { %v2446_v37 = vadd.f32 %v2445_v36, %v2444_v32 }
  0xfc   :  { %v3517_v38 = vadd.f32 %v2443_v31, %v1529_v34  ;;  %v1532_v39 = vadd.f32 %v2400_v35, %v3514_v26 }
  0xfe   :  { %v3520_v40 = vadd.f32 %v2446_v37, %v1532_v39  ;;  %v2401_v41 = vpop.f32.mrb[4].mxu0 }
  0xff   :  { %v2447_v42 = vpop.f32.mrb[4].mxu1  ;;  %v2402_v43 = vpop.f32.mrb[5].mxu0 }
 0x100   :  { %v2403_v44 = vadd.f32 %v2402_v43, %v2401_v41  ;;  %v2448_v45 = vpop.f32.mrb[5].mxu1  ;;  %v2404_v46 = vpop.f32.mrb[6].mxu0 }
 0x101   :  { %v2449_v47 = vadd.f32 %v2448_v45, %v2447_v42  ;;  %v2450_v48 = vpop.f32.mrb[6].mxu1  ;;  %v2405_v49 = vpop.f32.mrb[7].mxu0 }
 0x102   :  { %v1537_v50 = vadd.f32 %v2403_v44, %v3514_v26  ;;  %v2406_v51 = vadd.f32 %v2405_v49, %v2404_v46  ;;  %v2451_v52 = vpop.f32.mrb[7].mxu1 }
 0x103   :  { %v2452_v53 = vadd.f32 %v2451_v52, %v2450_v48 }
 0x104   :  { %v3523_v54 = vadd.f32 %v2449_v47, %v1537_v50  ;;  %v1540_v55 = vadd.f32 %v2406_v51, %v3514_v26 }
 0x106   :  { %v3526_v56 = vadd.f32 %v2452_v53, %v1540_v55  ;;  %v2407_v57 = vpop.f32.mrb[8].mxu0 }
 0x107   :  { %v2453_v58 = vpop.f32.mrb[8].mxu1  ;;  %v2408_v59 = vpop.f32.mrb[9].mxu0 }
 0x108   :  { %v2409_v60 = vadd.f32 %v2408_v59, %v2407_v57  ;;  %v2454_v61 = vpop.f32.mrb[9].mxu1  ;;  %v2410_v62 = vpop.f32.mrb[10].mxu0 }
 0x109   :  { %v2455_v63 = vadd.f32 %v2454_v61, %v2453_v58  ;;  %v2456_v0 = vpop.f32.mrb[10].mxu1  ;;  %v2411_v1 = vpop.f32.mrb[11].mxu0 }
 0x10a   :  { %v1545_v2 = vadd.f32 %v2409_v60, %v3514_v26  ;;  %v2412_v3 = vadd.f32 %v2411_v1, %v2410_v62  ;;  %v2457_v4 = vpop.f32.mrb[11].mxu1 }
 0x10b   :  { %v2458_v5 = vadd.f32 %v2457_v4, %v2456_v0 }
 0x10c   :  { %v3529_v6 = vadd.f32 %v2455_v63, %v1545_v2  ;;  %v1548_v7 = vadd.f32 %v2412_v3, %v3514_v26 }
 0x10e   :  { %v3532_v8 = vadd.f32 %v2458_v5, %v1548_v7  ;;  %v2413_v9 = vpop.f32.mrb[12].mxu0 }
 0x10f   :  { %v2459_v10 = vpop.f32.mrb[12].mxu1  ;;  %v2414_v11 = vpop.f32.mrb[13].mxu0 }
 0x110   :  { %v2415_v12 = vadd.f32 %v2414_v11, %v2413_v9  ;;  %v2460_v13 = vpop.f32.mrb[13].mxu1  ;;  %v2416_v14 = vpop.f32.mrb[14].mxu0 }
 0x111   :  { %v2461_v15 = vadd.f32 %v2460_v13, %v2459_v10  ;;  %v2462_v16 = vpop.f32.mrb[14].mxu1  ;;  %v2417_v17 = vpop.f32.mrb[15].mxu0 }
 0x112   :  { %v1553_v18 = vadd.f32 %v2415_v12, %v3514_v26  ;;  %v2418_v19 = vadd.f32 %v2417_v17, %v2416_v14  ;;  %v2463_v20 = vpop.f32.mrb[15].mxu1 }
 0x113   :  { %v2464_v21 = vadd.f32 %v2463_v20, %v2462_v16 }
 0x114   :  { %v3535_v22 = vadd.f32 %v2461_v15, %v1553_v18  ;;  %v1556_v23 = vadd.f32 %v2418_v19, %v3514_v26 }
 0x116   :  { %v3538_v24 = vadd.f32 %v2464_v21, %v1556_v23  ;;  %v2419_v25 = vpop.f32.mrb[16].mxu0 }
 0x117   :  { %v2465_v27 = vpop.f32.mrb[16].mxu1  ;;  %v2420_v28 = vpop.f32.mrb[17].mxu0 }
 0x118   :  { %v2421_v29 = vadd.f32 %v2420_v28, %v2419_v25  ;;  %v2466_v30 = vpop.f32.mrb[17].mxu1  ;;  %v2422_v31 = vpop.f32.mrb[18].mxu0 }
 0x119   :  { %v2467_v32 = vadd.f32 %v2466_v30, %v2465_v27  ;;  %v2468_v33 = vpop.f32.mrb[18].mxu1  ;;  %v2423_v34 = vpop.f32.mrb[19].mxu0 }
 0x11a   :  { %v1561_v35 = vadd.f32 %v2421_v29, %v3514_v26  ;;  %v2469_v36 = vpop.f32.mrb[19].mxu1 }
 0x11c   :  { %v3541_v37 = vadd.f32 %v2467_v32, %v1561_v35 }
 0x11e   :  { %v2487_v39 = vpop.f32.mrb[20].mxu0 }
 0x11f   :  { %v2533_v41 = vpop.f32.mrb[20].mxu1  ;;  %v2488_v42 = vpop.f32.mrb[21].mxu0 }
 0x120   :  { %v2489_v43 = vadd.f32 %v2488_v42, %v2487_v39  ;;  %v2534_v44 = vpop.f32.mrb[21].mxu1  ;;  %v2490_v45 = vpop.f32.mrb[22].mxu0 }
 0x121   :  { %v2535_v46 = vadd.f32 %v2534_v44, %v2533_v41  ;;  %v2536_v47 = vpop.f32.mrb[22].mxu1  ;;  %v2491_v48 = vpop.f32.mrb[23].mxu0 }
 0x122   :  { %v1673_v49 = vadd.f32 %v2489_v43, %v3517_v38  ;;  %v2492_v50 = vadd.f32 %v2491_v48, %v2490_v45  ;;  %v2537_v51 = vpop.f32.mrb[23].mxu1 }
 0x123   :  { %v2538_v52 = vadd.f32 %v2537_v51, %v2536_v47 }
 0x124   :  { %v3544_v53 = vadd.f32 %v2535_v46, %v1673_v49  ;;  %v1676_v26 = vadd.f32 %v2492_v50, %v3520_v40 }
 0x126   :  { %v3547_v55 = vadd.f32 %v2538_v52, %v1676_v26  ;;  %v2493_v57 = vpop.f32.mrb[24].mxu0 }
 0x127   :  { %v2539_v58 = vpop.f32.mrb[24].mxu1  ;;  %v2494_v59 = vpop.f32.mrb[25].mxu0 }
 0x128   :  { %v2495_v60 = vadd.f32 %v2494_v59, %v2493_v57  ;;  %v2540_v61 = vpop.f32.mrb[25].mxu1  ;;  %v2496_v62 = vpop.f32.mrb[26].mxu0 }
 0x129   :  { %v2541_v63 = vadd.f32 %v2540_v61, %v2539_v58  ;;  %v2542_v0 = vpop.f32.mrb[26].mxu1  ;;  %v2497_v1 = vpop.f32.mrb[27].mxu0 }
 0x12a   :  { %v1681_v38 = vadd.f32 %v2495_v60, %v3523_v54  ;;  %v2498_v2 = vadd.f32 %v2497_v1, %v2496_v62  ;;  %v2543_v3 = vpop.f32.mrb[27].mxu1 }
 0x12b   :  { %v2544_v4 = vadd.f32 %v2543_v3, %v2542_v0 }
 0x12c   :  { %v3550_v5 = vadd.f32 %v2541_v63, %v1681_v38  ;;  %v1684_v40 = vadd.f32 %v2498_v2, %v3526_v56 }
 0x12e   :  { %v3553_v7 = vadd.f32 %v2544_v4, %v1684_v40  ;;  %v2499_v9 = vpop.f32.mrb[28].mxu0 }
 0x12f   :  { %v2545_v10 = vpop.f32.mrb[28].mxu1  ;;  %v2500_v11 = vpop.f32.mrb[29].mxu0 }
 0x130   :  { %v2501_v12 = vadd.f32 %v2500_v11, %v2499_v9  ;;  %v2546_v13 = vpop.f32.mrb[29].mxu1  ;;  %v2502_v14 = vpop.f32.mrb[30].mxu0 }
 0x131   :  { %v2547_v15 = vadd.f32 %v2546_v13, %v2545_v10  ;;  %v2548_v16 = vpop.f32.mrb[30].mxu1  ;;  %v2503_v17 = vpop.f32.mrb[31].mxu0 }
 0x132   :  { %v1689_v54 = vadd.f32 %v2501_v12, %v3529_v6  ;;  %v2504_v18 = vadd.f32 %v2503_v17, %v2502_v14  ;;  %v2549_v19 = vpop.f32.mrb[31].mxu1 }
 0x133   :  { %v2550_v20 = vadd.f32 %v2549_v19, %v2548_v16 }
 0x134   :  { %v3556_v21 = vadd.f32 %v2547_v15, %v1689_v54  ;;  %v1692_v56 = vadd.f32 %v2504_v18, %v3532_v8 }
 0x136   :  { %v3559_v23 = vadd.f32 %v2550_v20, %v1692_v56  ;;  %v2505_v25 = vpop.f32.mrb[32].mxu0 }
 0x137   :  { %v2551_v27 = vpop.f32.mrb[32].mxu1  ;;  %v2506_v28 = vpop.f32.mrb[33].mxu0 }
 0x138   :  { %v2507_v29 = vadd.f32 %v2506_v28, %v2505_v25  ;;  %v2552_v30 = vpop.f32.mrb[33].mxu1  ;;  %v2508_v31 = vpop.f32.mrb[34].mxu0 }
 0x139   :  { %v2553_v32 = vadd.f32 %v2552_v30, %v2551_v27  ;;  %v2554_v33 = vpop.f32.mrb[34].mxu1  ;;  %v2509_v34 = vpop.f32.mrb[35].mxu0 }
 0x13a   :  { %v1697_v6 = vadd.f32 %v2507_v29, %v3535_v22  ;;  %v2510_v35 = vadd.f32 %v2509_v34, %v2508_v31  ;;  %v2555_v36 = vpop.f32.mrb[35].mxu1 }
 0x13b   :  { %v2556_v39 = vadd.f32 %v2555_v36, %v2554_v33 }
 0x13c   :  { %v3562_v41 = vadd.f32 %v2553_v32, %v1697_v6  ;;  %v1700_v8 = vadd.f32 %v2510_v35, %v3538_v24 }
 0x13e   :  { %v3565_v42 = vadd.f32 %v2556_v39, %v1700_v8  ;;  %v2511_v43 = vpop.f32.mrb[36].mxu0 }
 0x13f   :  { %v2557_v44 = vpop.f32.mrb[36].mxu1  ;;  %v2512_v45 = vpop.f32.mrb[37].mxu0 }
 0x140   :  { %v2513_v46 = vadd.f32 %v2512_v45, %v2511_v43  ;;  %v2558_v47 = vpop.f32.mrb[37].mxu1  ;;  %v2514_v48 = vpop.f32.mrb[38].mxu0 }
 0x141   :  { %v2559_v49 = vadd.f32 %v2558_v47, %v2557_v44  ;;  %v2560_v50 = vpop.f32.mrb[38].mxu1  ;;  %v2515_v51 = vpop.f32.mrb[39].mxu0 }
 0x142   :  { %v1705_v22 = vadd.f32 %v2513_v46, %v3541_v37  ;;  %v2561_v52 = vpop.f32.mrb[39].mxu1 }
 0x144   :  { %v3568_v26 = vadd.f32 %v2559_v49, %v1705_v22 }
 0x146   :  { %v2579_v57 = vpop.f32.mrb[40].mxu0 }
 0x147   :  { %v2625_v58 = vpop.f32.mrb[40].mxu1  ;;  %v2580_v59 = vpop.f32.mrb[41].mxu0 }
 0x148   :  { %v2581_v24 = vadd.f32 %v2580_v59, %v2579_v57  ;;  %v2626_v60 = vpop.f32.mrb[41].mxu1  ;;  %v2582_v61 = vpop.f32.mrb[42].mxu0 }
 0x149   :  { %v2627_v62 = vadd.f32 %v2626_v60, %v2625_v58  ;;  %v2628_v63 = vpop.f32.mrb[42].mxu1  ;;  %v2583_v0 = vpop.f32.mrb[43].mxu0 }
 0x14a   :  { %v1817_v1 = vadd.f32 %v2581_v24, %v3544_v53  ;;  %v2584_v38 = vadd.f32 %v2583_v0, %v2582_v61  ;;  %v2629_v2 = vpop.f32.mrb[43].mxu1 }
 0x14b   :  { %v2630_v3 = vadd.f32 %v2629_v2, %v2628_v63 }
 0x14c   :  { %v3571_v4 = vadd.f32 %v2627_v62, %v1817_v1  ;;  %v1820_v37 = vadd.f32 %v2584_v38, %v3547_v55 }
 0x14e   :  { %v3574_v40 = vadd.f32 %v2630_v3, %v1820_v37  ;;  %v2585_v9 = vpop.f32.mrb[44].mxu0 }
 0x14f   :  { %v2631_v10 = vpop.f32.mrb[44].mxu1  ;;  %v2586_v11 = vpop.f32.mrb[45].mxu0 }
 0x150   :  { %v2587_v12 = vadd.f32 %v2586_v11, %v2585_v9  ;;  %v2632_v13 = vpop.f32.mrb[45].mxu1  ;;  %v2588_v14 = vpop.f32.mrb[46].mxu0 }
 0x151   :  { %v2633_v15 = vadd.f32 %v2632_v13, %v2631_v10  ;;  %v2634_v16 = vpop.f32.mrb[46].mxu1  ;;  %v2589_v17 = vpop.f32.mrb[47].mxu0 }
 0x152   :  { %v1825_v53 = vadd.f32 %v2587_v12, %v3550_v5  ;;  %v2590_v54 = vadd.f32 %v2589_v17, %v2588_v14  ;;  %v2635_v18 = vpop.f32.mrb[47].mxu1 }
 0x153   :  { %v2636_v19 = vadd.f32 %v2635_v18, %v2634_v16 }
 0x154   :  { %v3577_v20 = vadd.f32 %v2633_v15, %v1825_v53  ;;  %v1828_v55 = vadd.f32 %v2590_v54, %v3553_v7 }
 0x156   :  { %v3580_v56 = vadd.f32 %v2636_v19, %v1828_v55  ;;  %v2591_v25 = vpop.f32.mrb[48].mxu0 }
 0x157   :  { %v2637_v27 = vpop.f32.mrb[48].mxu1  ;;  %v2592_v28 = vpop.f32.mrb[49].mxu0 }
 0x158   :  { %v2593_v29 = vadd.f32 %v2592_v28, %v2591_v25  ;;  %v2638_v30 = vpop.f32.mrb[49].mxu1  ;;  %v2594_v31 = vpop.f32.mrb[50].mxu0 }
 0x159   :  { %v2639_v32 = vadd.f32 %v2638_v30, %v2637_v27  ;;  %v2640_v33 = vpop.f32.mrb[50].mxu1  ;;  %v2595_v34 = vpop.f32.mrb[51].mxu0 }
 0x15a   :  { %v1833_v5 = vadd.f32 %v2593_v29, %v3556_v21  ;;  %v2596_v6 = vadd.f32 %v2595_v34, %v2594_v31  ;;  %v2641_v35 = vpop.f32.mrb[51].mxu1 }
 0x15b   :  { %v2642_v36 = vadd.f32 %v2641_v35, %v2640_v33 }
 0x15c   :  { %v3583_v39 = vadd.f32 %v2639_v32, %v1833_v5  ;;  %v1836_v7 = vadd.f32 %v2596_v6, %v3559_v23 }
 0x15e   :  { %v3586_v8 = vadd.f32 %v2642_v36, %v1836_v7  ;;  %v2597_v43 = vpop.f32.mrb[52].mxu0 }
 0x15f   :  { %v2643_v44 = vpop.f32.mrb[52].mxu1  ;;  %v2598_v45 = vpop.f32.mrb[53].mxu0 }
 0x160   :  { %v2599_v46 = vadd.f32 %v2598_v45, %v2597_v43  ;;  %v2644_v47 = vpop.f32.mrb[53].mxu1  ;;  %v2600_v48 = vpop.f32.mrb[54].mxu0 }
 0x161   :  { %v2645_v49 = vadd.f32 %v2644_v47, %v2643_v44  ;;  %v2646_v50 = vpop.f32.mrb[54].mxu1  ;;  %v2601_v51 = vpop.f32.mrb[55].mxu0 }
 0x162   :  { %v1841_v21 = vadd.f32 %v2599_v46, %v3562_v41  ;;  %v2602_v22 = vadd.f32 %v2601_v51, %v2600_v48  ;;  %v2647_v52 = vpop.f32.mrb[55].mxu1 }
 0x163   :  { %v2648_v57 = vadd.f32 %v2647_v52, %v2646_v50 }
 0x164   :  { %v3589_v58 = vadd.f32 %v2645_v49, %v1841_v21  ;;  %v1844_v23 = vadd.f32 %v2602_v22, %v3565_v42 }
 0x166   :  { %v3592_v59 = vadd.f32 %v2648_v57, %v1844_v23  ;;  %v2603_v24 = vpop.f32.mrb[56].mxu0 }
 0x167   :  { %v2649_v60 = vpop.f32.mrb[56].mxu1  ;;  %v2604_v61 = vpop.f32.mrb[57].mxu0 }
 0x168   :  { %v2605_v62 = vadd.f32 %v2604_v61, %v2603_v24  ;;  %v2650_v63 = vpop.f32.mrb[57].mxu1  ;;  %v2606_v0 = vpop.f32.mrb[58].mxu0 }
 0x169   :  { %v2651_v1 = vadd.f32 %v2650_v63, %v2649_v60  ;;  %v2652_v38 = vpop.f32.mrb[58].mxu1  ;;  %v2607_v2 = vpop.f32.mrb[59].mxu0 }
 0x16a   :  { %v1849_v41 = vadd.f32 %v2605_v62, %v3568_v26  ;;  %v2653_v3 = vpop.f32.mrb[59].mxu1 }
 0x16c   :  { %v3595_v37 = vadd.f32 %v2651_v1, %v1849_v41 }
 0x16e   :  { %v2671_v9 = vpop.f32.mrb[60].mxu0 }
 0x16f   :  { %v2717_v10 = vpop.f32.mrb[60].mxu1  ;;  %v2672_v11 = vpop.f32.mrb[61].mxu0 }
 0x170   :  { %v2673_v42 = vadd.f32 %v2672_v11, %v2671_v9  ;;  %v2718_v12 = vpop.f32.mrb[61].mxu1  ;;  %v2674_v13 = vpop.f32.mrb[62].mxu0 }
 0x171   :  { %v2719_v14 = vadd.f32 %v2718_v12, %v2717_v10  ;;  %v2720_v15 = vpop.f32.mrb[62].mxu1  ;;  %v2675_v16 = vpop.f32.mrb[63].mxu0 }
 0x172   :  { %v1961_v17 = vadd.f32 %v2673_v42, %v3571_v4  ;;  %v2676_v53 = vadd.f32 %v2675_v16, %v2674_v13  ;;  %v2721_v54 = vpop.f32.mrb[63].mxu1 }
 0x173   :  { %v2722_v18 = vadd.f32 %v2721_v54, %v2720_v15 }
 0x174   :  { %v2033_v19 = vadd.f32 %v2719_v14, %v1961_v17  ;;  %v1964_v26 = vadd.f32 %v2676_v53, %v3574_v40 }
 0x176   :  { %v2036_v55 = vadd.f32 %v2722_v18, %v1964_v26  ;;  %v2677_v25 = vpop.f32.mrb[64].mxu0  ;;  %v2070_v29 = vmax.f32 %v2033_v19, 0.0 }
 0x177   :  { %v2723_v27 = vpop.f32.mrb[64].mxu1  ;;  %v2678_v28 = vpop.f32.mrb[65].mxu0 }
 0x178   :  { %v2071_v30 = vmax.f32 %v2036_v55, 0.0  ;;  %v2679_v31 = vadd.f32 %v2678_v28, %v2677_v25  ;;  %v2724_v32 = vpop.f32.mrb[65].mxu1  ;;  %v2680_v33 = vpop.f32.mrb[66].mxu0 }
 0x179   :  { %v2725_v34 = vadd.f32 %v2724_v32, %v2723_v27  ;;  %v2726_v5 = vpop.f32.mrb[66].mxu1  ;;  %v2681_v6 = vpop.f32.mrb[67].mxu0 }
 0x17a   :  { %v2359_v35 = vpack.c.bf16 %v2071_v30, %v2070_v29  ;;  %v1969_v4 = vadd.f32 %v2679_v31, %v3577_v20  ;;  %v2682_v36 = vadd.f32 %v2681_v6, %v2680_v33  ;;  %v2727_v7 = vpop.f32.mrb[67].mxu1 }
 0x17b   :  { %v2728_v43 = vadd.f32 %v2727_v7, %v2726_v5 }
 0x17c   :  { %2360 = vst [vmem:[%s3624_s3] sm:$0xff] %v2359_v35   ;;  %v2041_v40 = vadd.f32 %v2725_v34, %v1969_v4  ;;  %v1972_v44 = vadd.f32 %v2682_v36, %v3580_v56 }
 0x17e   :  { %v2044_v45 = vadd.f32 %v2728_v43, %v1972_v44  ;;  %v2683_v46 = vpop.f32.mrb[68].mxu0  ;;  %v2072_v49 = vmax.f32 %v2041_v40, 0.0 }
 0x17f   :  { %v2729_v47 = vpop.f32.mrb[68].mxu1  ;;  %v2684_v48 = vpop.f32.mrb[69].mxu0 }
 0x180   :  { %v2073_v50 = vmax.f32 %v2044_v45, 0.0  ;;  %v2685_v51 = vadd.f32 %v2684_v48, %v2683_v46  ;;  %v2730_v21 = vpop.f32.mrb[69].mxu1  ;;  %v2686_v22 = vpop.f32.mrb[70].mxu0 }
 0x181   :  { %v2731_v20 = vadd.f32 %v2730_v21, %v2729_v47  ;;  %v2732_v52 = vpop.f32.mrb[70].mxu1  ;;  %v2687_v57 = vpop.f32.mrb[71].mxu0 }
 0x182   :  { %v2364_v23 = vpack.c.bf16 %v2073_v50, %v2072_v49  ;;  %v1977_v24 = vadd.f32 %v2685_v51, %v3583_v39  ;;  %v2688_v60 = vadd.f32 %v2687_v57, %v2686_v22  ;;  %v2733_v61 = vpop.f32.mrb[71].mxu1 }
 0x183   :  { %v2734_v62 = vadd.f32 %v2733_v61, %v2732_v52 }
 0x184   :  { %2376 = vst [vmem:[%s3624_s3 + $0x8] sm:$0xff] %v2364_v23   ;;  %v2049_v56 = vadd.f32 %v2731_v20, %v1977_v24  ;;  %v1980_v63 = vadd.f32 %v2688_v60, %v3586_v8 }
 0x186   :  { %v2052_v0 = vadd.f32 %v2734_v62, %v1980_v63  ;;  %v2689_v1 = vpop.f32.mrb[72].mxu0  ;;  %v2074_v41 = vmax.f32 %v2049_v56, 0.0 }
 0x187   :  { %v2735_v38 = vpop.f32.mrb[72].mxu1  ;;  %v2690_v2 = vpop.f32.mrb[73].mxu0 }
 0x188   :  { %v2075_v3 = vmax.f32 %v2052_v0, 0.0  ;;  %v2691_v9 = vadd.f32 %v2690_v2, %v2689_v1  ;;  %v2736_v10 = vpop.f32.mrb[73].mxu1  ;;  %v2692_v11 = vpop.f32.mrb[74].mxu0 }
 0x189   :  { %v2737_v39 = vadd.f32 %v2736_v10, %v2735_v38  ;;  %v2738_v42 = vpop.f32.mrb[74].mxu1  ;;  %v2693_v12 = vpop.f32.mrb[75].mxu0 }
 0x18a   :  { %v2369_v13 = vpack.c.bf16 %v2075_v3, %v2074_v41  ;;  %v1985_v14 = vadd.f32 %v2691_v9, %v3589_v58  ;;  %v2694_v15 = vadd.f32 %v2693_v12, %v2692_v11  ;;  %v2739_v16 = vpop.f32.mrb[75].mxu1 }
 0x18b   :  { %v2740_v17 = vadd.f32 %v2739_v16, %v2738_v42 }
 0x18c   :  { %2377 = vst [vmem:[%s3624_s3 + $0x10] sm:$0xff] %v2369_v13   ;;  %v2057_v8 = vadd.f32 %v2737_v39, %v1985_v14  ;;  %v1988_v53 = vadd.f32 %v2694_v15, %v3592_v59 }
 0x18e   :  { %v2060_v54 = vadd.f32 %v2740_v17, %v1988_v53  ;;  %v2695_v18 = vpop.f32.mrb[76].mxu0  ;;  %v2076_v55 = vmax.f32 %v2057_v8, 0.0 }
 0x18f   :  { %v2741_v19 = vpop.f32.mrb[76].mxu1  ;;  %v2696_v26 = vpop.f32.mrb[77].mxu0 }
 0x190   :  { %v2077_v25 = vmax.f32 %v2060_v54, 0.0  ;;  %v2697_v27 = vadd.f32 %v2696_v26, %v2695_v18  ;;  %v2742_v28 = vpop.f32.mrb[77].mxu1  ;;  %v2698_v29 = vpop.f32.mrb[78].mxu0 }
 0x191   :  { %v2743_v58 = vadd.f32 %v2742_v28, %v2741_v19  ;;  %v2744_v30 = vpop.f32.mrb[78].mxu1  ;;  %v2699_v31 = vpop.f32.mrb[79].mxu0 }
 0x192   :  { %v2374_v32 = vpack.c.bf16 %v2077_v25, %v2076_v55  ;;  %v1993_v33 = vadd.f32 %v2697_v27, %v3595_v37  ;;  %v2745_v34 = vpop.f32.mrb[79].mxu1 }
 0x194   :  { %2378 = vst [vmem:[%s3624_s3 + $0x18] sm:$0xff] %v2374_v32   ;;  %v2065_v59 = vadd.f32 %v2743_v58, %v1993_v33 }
 0x196   :  { %v2078_v5 = vmax.f32 %v2065_v59, 0.0 }
 0x198   :  { %v2355_v6 = vpack.c.bf16 %v2078_v5, %v2078_v5 }
 0x19a   :  { %2124 = vst [vmem:[%s3624_s3 + $0x20] sm:$0xf] %v2355_v6 }

// kernel: critic_forward.6
= control target key start
LH: loop header
LB: loop body
LE: loop exit
PB: predicated region body
PF: predicated region fallthrough
CT: control target
= control target key end

     0   :  { %s1632_s1 = inlined_call_operand.vmem [shape: bf16[1152,128], index: 1, kind: input, shape index: {}]   ;;  %s1633_s0 = inlined_call_operand.vmem [shape: bf16[32,1152], index: 0, kind: input, shape index: {}]   ;;  %s1634_s2 = inlined_call_operand.vmem [shape: f32[1,128], index: 2, kind: input, shape index: {}]   ;;  %s1635_s3 = inlined_call_operand.vmem [shape: bf16[32,128], index: 3, kind: output, shape index: {}]  }
   0x1   :  { %v1235_v0 = vld [vmem:[%s1632_s1 + $0x40] sm:$0xff]   ;;  %v1239_v4 = vld [vmem:[%s1632_s1 + $0x48] sm:$0xff]   ;;  %v1243_v8 = vld [vmem:[%s1632_s1 + $0x50] sm:$0xff]  }
   0x2   :  { %v1236_v1 = vld [vmem:[%s1632_s1] sm:$0xff]   ;;  %1093 = vmatprep.subr.bf16.mxu0 %v1235_v0  ;;  %v1240_v5 = vld [vmem:[%s1632_s1 + $0x8] sm:$0xff]   ;;  %v1244_v9 = vld [vmem:[%s1632_s1 + $0x10] sm:$0xff]  }
   0x3   :  { %v1237_v2 = vld [vmem:[%s1632_s1 + $0xc0] sm:$0xff]   ;;  %1094 = vmatpush3.bf16.msra.mxu0 %v1236_v1  ;;  %v1241_v6 = vld [vmem:[%s1632_s1 + $0xc8] sm:$0xff]   ;;  %v1245_v10 = vld [vmem:[%s1632_s1 + $0xd0] sm:$0xff]  }
   0x4   :  { %v1238_v3 = vld [vmem:[%s1632_s1 + $0x80] sm:$0xff]   ;;  %1121 = vmatprep.subr.bf16.mxu1 %v1237_v2  ;;  %1095 = vmatprep.subr.bf16.mxu0 %v1239_v4  ;;  %v1242_v7 = vld [vmem:[%s1632_s1 + $0x88] sm:$0xff]   ;;  %v1246_v11 = vld [vmem:[%s1632_s1 + $0x90] sm:$0xff]  }
   0x5   :  { %1122 = vmatpush3.bf16.msra.mxu1 %v1238_v3  ;;  %v1247_v12 = vld [vmem:[%s1632_s1 + $0x58] sm:$0xff]   ;;  %v1251_v16 = vld [vmem:[%s1632_s1 + $0x60] sm:$0xff]   ;;  %v1255_v20 = vld [vmem:[%s1632_s1 + $0x68] sm:$0xff]  }
   0x6   :  { %1123 = vmatprep.subr.bf16.mxu1 %v1241_v6  ;;  %v1248_v13 = vld [vmem:[%s1632_s1 + $0x18] sm:$0xff]   ;;  %v1252_v17 = vld [vmem:[%s1632_s1 + $0x20] sm:$0xff]   ;;  %v1256_v21 = vld [vmem:[%s1632_s1 + $0x28] sm:$0xff]  }
   0x7   :  { %1096 = vmatpush3.bf16.msra.mxu0 %v1240_v5  ;;  %v1249_v14 = vld [vmem:[%s1632_s1 + $0xd8] sm:$0xff]   ;;  %v1253_v18 = vld [vmem:[%s1632_s1 + $0xe0] sm:$0xff]   ;;  %v1257_v22 = vld [vmem:[%s1632_s1 + $0xe8] sm:$0xff]  }
   0x8   :  { %1097 = vmatprep.subr.bf16.mxu0 %v1243_v8  ;;  %v1250_v15 = vld [vmem:[%s1632_s1 + $0x98] sm:$0xff]   ;;  %v1254_v19 = vld [vmem:[%s1632_s1 + $0xa0] sm:$0xff]   ;;  %v1258_v23 = vld [vmem:[%s1632_s1 + $0xa8] sm:$0xff]  }
   0x9   :  { %1124 = vmatpush3.bf16.msra.mxu1 %v1242_v7  ;;  %v1259_v24 = vld [vmem:[%s1632_s1 + $0x70] sm:$0xff]   ;;  %v1263_v28 = vld [vmem:[%s1632_s1 + $0x78] sm:$0xff]   ;;  %v1266_v31 = vld [vmem:[%s1633_s0] ss:$36 sps:$4 sm:$0xff]  }
   0xa   :  { %1125 = vmatprep.subr.bf16.mxu1 %v1245_v10  ;;  %v1260_v25 = vld [vmem:[%s1632_s1 + $0x30] sm:$0xff]   ;;  %v1264_v29 = vld [vmem:[%s1632_s1 + $0x38] sm:$0xff]   ;;  %v1268_v32 = vld [vmem:[%s1633_s0 + $0x4] ss:$36 sps:$4 sm:$0xff]  }
   0xb   :  { %1098 = vmatpush3.bf16.msra.mxu0 %v1244_v9  ;;  %v1261_v26 = vld [vmem:[%s1632_s1 + $0xf0] sm:$0xff]   ;;  %v1265_v30 = vld [vmem:[%s1632_s1 + $0xf8] sm:$0xff]   ;;  %742 = vmatprep.mubr.bf16.mxu0 %v1268_v32  ;;  %v1270_v34 = vld [vmem:[%s1632_s1 + $0x140] sm:$0xff]  }
   0xc   :  { %1099 = vmatprep.subr.bf16.mxu0 %v1247_v12  ;;  %v1262_v27 = vld [vmem:[%s1632_s1 + $0xb0] sm:$0xff]   ;;  %v1269_v33 = vld [vmem:[%s1632_s1 + $0xb8] sm:$0xff]   ;;  %v1271_v35 = vld [vmem:[%s1633_s0 + $0x8] ss:$36 sps:$4 sm:$0xff]  }
   0xd   :  { %1126 = vmatpush3.bf16.msra.mxu1 %v1246_v11  ;;  %v1273_v36 = vld [vmem:[%s1633_s0 + $0xc] ss:$36 sps:$4 sm:$0xff]   ;;  %v1274_v37 = vld [vmem:[%s1632_s1 + $0x100] sm:$0xff]   ;;  %v1285_v48 = vld [vmem:[%s1632_s1 + $0x158] sm:$0xff]  }
   0xe   :  { %1127 = vmatprep.subr.bf16.mxu1 %v1249_v14  ;;  %791 = vmatprep.mubr.bf16.mxu1 %v1273_v36  ;;  %v1275_v38 = vld [vmem:[%s1632_s1 + $0x1c0] sm:$0xff]   ;;  %v1277_v40 = vld [vmem:[%s1632_s1 + $0x148] sm:$0xff]   ;;  %v1281_v44 = vld [vmem:[%s1632_s1 + $0x150] sm:$0xff]  }
   0xf   :  { %1100 = vmatpush3.bf16.msra.mxu0 %v1248_v13  ;;  %v1276_v39 = vld [vmem:[%s1632_s1 + $0x180] sm:$0xff]   ;;  %v1278_v41 = vld [vmem:[%s1632_s1 + $0x108] sm:$0xff]   ;;  %v1282_v45 = vld [vmem:[%s1632_s1 + $0x110] sm:$0xff]  }
  0x10   :  { %1101 = vmatprep.subr.bf16.mxu0 %v1251_v16  ;;  %v1279_v42 = vld [vmem:[%s1632_s1 + $0x1c8] sm:$0xff]   ;;  %v1283_v46 = vld [vmem:[%s1632_s1 + $0x1d0] sm:$0xff]   ;;  %v1286_v49 = vld [vmem:[%s1632_s1 + $0x118] sm:$0xff]  }
  0x11   :  { %1128 = vmatpush3.bf16.msra.mxu1 %v1250_v15  ;;  %v1280_v43 = vld [vmem:[%s1632_s1 + $0x188] sm:$0xff]   ;;  %v1284_v47 = vld [vmem:[%s1632_s1 + $0x190] sm:$0xff]   ;;  %v1287_v50 = vld [vmem:[%s1632_s1 + $0x1d8] sm:$0xff]  }
  0x12   :  { %1129 = vmatprep.subr.bf16.mxu1 %v1253_v18  ;;  %v1288_v51 = vld [vmem:[%s1632_s1 + $0x198] sm:$0xff]   ;;  %v1289_v52 = vld [vmem:[%s1632_s1 + $0x160] sm:$0xff]   ;;  %v1293_v56 = vld [vmem:[%s1632_s1 + $0x168] sm:$0xff]  }
  0x13   :  { %1102 = vmatpush3.bf16.msra.mxu0 %v1252_v17  ;;  %v1290_v53 = vld [vmem:[%s1632_s1 + $0x120] sm:$0xff]   ;;  %v1294_v57 = vld [vmem:[%s1633_s0 + $0x4c] ss:$36 sps:$4 sm:$0xff]   ;;  %v1299_v61 = vld [vmem:[%s1633_s0 + $0x54] ss:$36 sps:$4 sm:$0xff]  }
  0x14   :  { %1103 = vmatprep.subr.bf16.mxu0 %v1255_v20  ;;  %v1291_v54 = vld [vmem:[%s1632_s1 + $0x1e0] sm:$0xff]   ;;  %v1296_v58 = vld [vmem:[%s1632_s1 + $0x128] sm:$0xff]   ;;  %v1302_v63 = vld [vmem:[%s1633_s0 + $0x50] ss:$36 sps:$4 sm:$0xff]  }
  0x15   :  { %1130 = vmatpush3.bf16.msra.mxu1 %v1254_v19  ;;  %v1292_v55 = vld [vmem:[%s1632_s1 + $0x1a0] sm:$0xff]   ;;  %v1297_v59 = vld [vmem:[%s1633_s0 + $0x48] ss:$36 sps:$4 sm:$0xff]   ;;  %v1303_v0 = vld [vmem:[%s1632_s1 + $0x170] sm:$0xff]  }
  0x16   :  { %1131 = vmatprep.subr.bf16.mxu1 %v1257_v22  ;;  %v1298_v60 = vld [vmem:[%s1632_s1 + $0x1e8] sm:$0xff]   ;;  %v1304_v1 = vld [vmem:[%s1632_s1 + $0x130] sm:$0xff]   ;;  %v1307_v4 = vld [vmem:[%s1632_s1 + $0x178] sm:$0xff]  }
  0x17   :  { %1104 = vmatpush3.bf16.msra.mxu0 %v1256_v21  ;;  %v1301_v62 = vld [vmem:[%s1632_s1 + $0x1a8] sm:$0xff]   ;;  %v1305_v2 = vld [vmem:[%s1632_s1 + $0x1f0] sm:$0xff]   ;;  %v1308_v5 = vld [vmem:[%s1632_s1 + $0x138] sm:$0xff]  }
  0x18   :  { %1105 = vmatprep.subr.bf16.mxu0 %v1259_v24  ;;  %v1306_v3 = vld [vmem:[%s1632_s1 + $0x1b0] sm:$0xff]   ;;  %v1309_v6 = vld [vmem:[%s1632_s1 + $0x1f8] sm:$0xff]   ;;  %v1314_v10 = vld [vmem:[%s1632_s1 + $0x200] sm:$0xff]  }
  0x19   :  { %1132 = vmatpush3.bf16.msra.mxu1 %v1258_v23  ;;  %v1310_v7 = vld [vmem:[%s1633_s0 + $0x10] ss:$36 sps:$4 sm:$0xff]   ;;  %v1313_v9 = vld [vmem:[%s1632_s1 + $0x1b8] sm:$0xff]   ;;  %v1318_v13 = vld [vmem:[%s1632_s1 + $0x208] sm:$0xff]  }
  0x1a   :  { %1133 = vmatprep.subr.bf16.mxu1 %v1261_v26  ;;  %v1312_v8 = vld [vmem:[%s1633_s0 + $0x14] ss:$36 sps:$4 sm:$0xff]   ;;  %v1317_v12 = vld [vmem:[%s1633_s0 + $0x1c] ss:$36 sps:$4 sm:$0xff]   ;;  %v1323_v17 = vld [vmem:[%s1633_s0 + $0x64] ss:$36 sps:$4 sm:$0xff]  }
  0x1b   :  { %1106 = vmatpush3.bf16.msra.mxu0 %v1260_v25  ;;  %v1315_v11 = vld [vmem:[%s1633_s0 + $0x18] ss:$36 sps:$4 sm:$0xff]   ;;  %v1322_v16 = vld [vmem:[%s1632_s1 + $0x210] sm:$0xff]   ;;  %v1325_v18 = vld [vmem:[%s1633_s0 + $0x60] ss:$36 sps:$4 sm:$0xff]  }
  0x1c   :  { %1107 = vmatprep.subr.bf16.mxu0 %v1263_v28  ;;  %v1319_v14 = vld [vmem:[%s1633_s0 + $0x5c] ss:$36 sps:$4 sm:$0xff]   ;;  %v1328_v22 = vld [vmem:[%s1632_s1 + $0x228] sm:$0xff]   ;;  %v1329_v23 = vld [vmem:[%s1632_s1 + $0x230] sm:$0xff]  }
  0x1d   :  { %1134 = vmatpush3.bf16.msra.mxu1 %v1262_v27  ;;  %v1321_v15 = vld [vmem:[%s1633_s0 + $0x58] ss:$36 sps:$4 sm:$0xff]   ;;  %v1327_v20 = vld [vmem:[%s1632_s1 + $0x220] sm:$0xff]   ;;  %v1332_v25 = vld [vmem:[%s1633_s0 + $0x68] ss:$36 sps:$4 sm:$0xff]  }
  0x1e   :  { %1135 = vmatprep.subr.bf16.mxu1 %v1265_v30  ;;  %v1326_v19 = vld [vmem:[%s1632_s1 + $0x218] sm:$0xff]   ;;  %v1331_v21 = vld [vmem:[%s1633_s0 + $0x20] ss:$36 sps:$4 sm:$0xff]  }
  0x1f   :  { %1108 = vmatpush3.bf16.msra.mxu0 %v1264_v29  ;;  %v1330_v24 = vld [vmem:[%s1632_s1 + $0x238] sm:$0xff]   ;;  %v983_v27 = vld [vmem:[%s1634_s2] ss:$0 sm:$0xff] }
  0x20   :  { %1149 = vmatprep.subr.bf16.mxu0 %v1270_v34 }
  0x21   :  { %1136 = vmatpush3.bf16.msra.mxu1 %v1269_v33 }
  0x22   :  { %743 = vmatmul.mubr.bf16.vlgmr.msra.gmra.mrb[0].mxu0 %v1266_v31  ;;  %1177 = vmatprep.subr.bf16.mxu1 %v1275_v38 }
  0x23   :  { %1150 = vmatpush3.bf16.msra.mxu0 %v1274_v37  ;;  %750 = vmatprep.mubr.bf16.mxu0 %v1294_v57 }
  0x24   :  { %792 = vmatmul.mubr.bf16.vlgmr.msra.gmra.mrb[0].mxu1 %v1271_v35  ;;  %1151 = vmatprep.subr.bf16.mxu0 %v1277_v40 }
  0x25   :  { %1178 = vmatpush3.bf16.msra.mxu1 %v1276_v39  ;;  %799 = vmatprep.mubr.bf16.mxu1 %v1299_v61 }
  0x26   :  { %1179 = vmatprep.subr.bf16.mxu1 %v1279_v42 }
  0x27   :  { %1152 = vmatpush3.bf16.msra.mxu0 %v1278_v41 }
  0x28   :  { %1153 = vmatprep.subr.bf16.mxu0 %v1281_v44 }
  0x29   :  { %1180 = vmatpush3.bf16.msra.mxu1 %v1280_v43 }
  0x2a   :  { %1181 = vmatprep.subr.bf16.mxu1 %v1283_v46  ;;  %751 = vmatmul.mubr.bf16.gmra.mrb[4].mxu0 %v1297_v59 }
  0x2b   :  { %1154 = vmatpush3.bf16.msra.mxu0 %v1282_v45  ;;  %840 = vmatprep.mubr.bf16.mxu0 %v1312_v8 }
  0x2c   :  { %1155 = vmatprep.subr.bf16.mxu0 %v1285_v48  ;;  %800 = vmatmul.mubr.bf16.gmra.mrb[4].mxu1 %v1302_v63 }
  0x2d   :  { %1182 = vmatpush3.bf16.msra.mxu1 %v1284_v47  ;;  %889 = vmatprep.mubr.bf16.mxu1 %v1317_v12 }
  0x2e   :  { %1183 = vmatprep.subr.bf16.mxu1 %v1287_v50 }
  0x2f   :  { %1156 = vmatpush3.bf16.msra.mxu0 %v1286_v49 }
  0x30   :  { %1157 = vmatprep.subr.bf16.mxu0 %v1289_v52 }
  0x31   :  { %1184 = vmatpush3.bf16.msra.mxu1 %v1288_v51 }
  0x32   :  { %1185 = vmatprep.subr.bf16.mxu1 %v1291_v54 }
  0x33   :  { %1158 = vmatpush3.bf16.msra.mxu0 %v1290_v53 }
  0x34   :  { %1159 = vmatprep.subr.bf16.mxu0 %v1293_v56 }
  0x35   :  { %1186 = vmatpush3.bf16.msra.mxu1 %v1292_v55 }
  0x36   :  { %1187 = vmatprep.subr.bf16.mxu1 %v1298_v60 }
  0x37   :  { %1160 = vmatpush3.bf16.msra.mxu0 %v1296_v58 }
  0x38   :  { %1161 = vmatprep.subr.bf16.mxu0 %v1303_v0 }
  0x39   :  { %1188 = vmatpush3.bf16.msra.mxu1 %v1301_v62 }
  0x3a   :  { %1189 = vmatprep.subr.bf16.mxu1 %v1305_v2 }
  0x3b   :  { %1162 = vmatpush3.bf16.msra.mxu0 %v1304_v1 }
  0x3c   :  { %1163 = vmatprep.subr.bf16.mxu0 %v1307_v4 }
  0x3d   :  { %1190 = vmatpush3.bf16.msra.mxu1 %v1306_v3 }
  0x3e   :  { %1191 = vmatprep.subr.bf16.mxu1 %v1309_v6 }
  0x3f   :  { %1164 = vmatpush3.bf16.msra.mxu0 %v1308_v5 }
  0x40   :  { %1215 = vmatprep.subr.bf16.mxu0 %v1314_v10 }
  0x41   :  { %1192 = vmatpush3.bf16.msra.mxu1 %v1313_v9 }
  0x42   :  { %841 = vmatmul.mubr.bf16.vlgmr.msra.gmra.mrb[8].mxu0 %v1310_v7 }
  0x43   :  { %1216 = vmatpush3.bf16.msra.mxu0 %v1314_v10  ;;  %848 = vmatprep.mubr.bf16.mxu0 %v1319_v14 }
  0x44   :  { %890 = vmatmul.mubr.bf16.vlgmr.msra.gmra.mrb[8].mxu1 %v1315_v11  ;;  %1217 = vmatprep.subr.bf16.mxu0 %v1318_v13 }
  0x45   :  { %897 = vmatprep.mubr.bf16.mxu1 %v1323_v17 }
  0x47   :  { %1218 = vmatpush3.bf16.msra.mxu0 %v1318_v13 }
  0x48   :  { %1219 = vmatprep.subr.bf16.mxu0 %v1322_v16 }
  0x4a   :  { %849 = vmatmul.mubr.bf16.gmra.mrb[12].mxu0 %v1321_v15 }
  0x4b   :  { %1220 = vmatpush3.bf16.msra.mxu0 %v1322_v16  ;;  %1231 = vmatprep.mubr.bf16.mxu0 %v1331_v21 }
  0x4c   :  { %898 = vmatmul.mubr.bf16.gmra.mrb[12].mxu1 %v1325_v18  ;;  %1221 = vmatprep.subr.bf16.mxu0 %v1326_v19 }
  0x4f   :  { %1222 = vmatpush3.bf16.msra.mxu0 %v1326_v19 }
  0x50   :  { %1223 = vmatprep.subr.bf16.mxu0 %v1327_v20 }
  0x53   :  { %1224 = vmatpush3.bf16.msra.mxu0 %v1327_v20 }
  0x54   :  { %1225 = vmatprep.subr.bf16.mxu0 %v1328_v22 }
  0x57   :  { %1226 = vmatpush3.bf16.msra.mxu0 %v1328_v22 }
  0x58   :  { %1227 = vmatprep.subr.bf16.mxu0 %v1329_v23 }
  0x5b   :  { %1228 = vmatpush3.bf16.msra.mxu0 %v1329_v23 }
  0x5c   :  { %1229 = vmatprep.subr.bf16.mxu0 %v1330_v24 }
  0x5f   :  { %1230 = vmatpush3.bf16.msra.mxu0 %v1330_v24 }
  0x62   :  { %1232 = vmatmul.mubr.bf16.vlgmr.msra.gmra.mrb[16].mxu0 %v1332_v25 }
  0xf5   :  { %v1109_v26 = vpop.f32.mrb[0].mxu0 }
  0xf6   :  { %v1110_v28 = vpop.f32.mrb[1].mxu0 }
  0xf7   :  { %v1111_v29 = vadd.f32 %v1110_v28, %v1109_v26  ;;  %v1112_v30 = vpop.f32.mrb[2].mxu0  ;;  %v1137_v31 = vpop.f32.mrb[0].mxu1 }
  0xf8   :  { %v1113_v32 = vpop.f32.mrb[3].mxu0  ;;  %v1138_v35 = vpop.f32.mrb[1].mxu1 }
  0xf9   :  { %v745_v33 = vadd.f32 %v1111_v29, %v983_v27  ;;  %v1114_v34 = vadd.f32 %v1113_v32, %v1112_v30  ;;  %v1139_v36 = vadd.f32 %v1138_v35, %v1137_v31  ;;  %v1140_v37 = vpop.f32.mrb[2].mxu1 }
  0xfa   :  { %v1141_v39 = vpop.f32.mrb[3].mxu1 }
  0xfb   :  { %v748_v38 = vadd.f32 %v1114_v34, %v983_v27  ;;  %v794_v40 = vadd.f32 %v1139_v36, %v745_v33  ;;  %v1142_v41 = vadd.f32 %v1141_v39, %v1140_v37 }
  0xfd   :  { %v797_v42 = vadd.f32 %v1142_v41, %v748_v38  ;;  %v1115_v43 = vpop.f32.mrb[4].mxu0 }
  0xfe   :  { %v1116_v44 = vpop.f32.mrb[5].mxu0 }
  0xff   :  { %v1117_v45 = vadd.f32 %v1116_v44, %v1115_v43  ;;  %v1118_v46 = vpop.f32.mrb[6].mxu0  ;;  %v1143_v47 = vpop.f32.mrb[4].mxu1 }
 0x100   :  { %v1119_v48 = vpop.f32.mrb[7].mxu0  ;;  %v1144_v51 = vpop.f32.mrb[5].mxu1 }
 0x101   :  { %v753_v49 = vadd.f32 %v1117_v45, %v983_v27  ;;  %v1120_v50 = vadd.f32 %v1119_v48, %v1118_v46  ;;  %v1145_v52 = vadd.f32 %v1144_v51, %v1143_v47  ;;  %v1146_v53 = vpop.f32.mrb[6].mxu1 }
 0x102   :  { %v1147_v55 = vpop.f32.mrb[7].mxu1 }
 0x103   :  { %v756_v54 = vadd.f32 %v1120_v50, %v983_v27  ;;  %v802_v56 = vadd.f32 %v1145_v52, %v753_v49  ;;  %v1148_v57 = vadd.f32 %v1147_v55, %v1146_v53 }
 0x105   :  { %v805_v58 = vadd.f32 %v1148_v57, %v756_v54 }
 0x115   :  { %v1165_v59 = vpop.f32.mrb[8].mxu0 }
 0x116   :  { %v1166_v60 = vpop.f32.mrb[9].mxu0 }
 0x117   :  { %v1167_v61 = vadd.f32 %v1166_v60, %v1165_v59  ;;  %v1168_v62 = vpop.f32.mrb[10].mxu0  ;;  %v1193_v63 = vpop.f32.mrb[8].mxu1 }
 0x118   :  { %v1169_v0 = vpop.f32.mrb[11].mxu0  ;;  %v1194_v3 = vpop.f32.mrb[9].mxu1 }
 0x119   :  { %v843_v1 = vadd.f32 %v1167_v61, %v794_v40  ;;  %v1170_v2 = vadd.f32 %v1169_v0, %v1168_v62  ;;  %v1195_v4 = vadd.f32 %v1194_v3, %v1193_v63  ;;  %v1196_v5 = vpop.f32.mrb[10].mxu1 }
 0x11a   :  { %v1197_v7 = vpop.f32.mrb[11].mxu1 }
 0x11b   :  { %v846_v6 = vadd.f32 %v1170_v2, %v797_v42  ;;  %v1198_v8 = vadd.f32 %v1197_v7, %v1196_v5  ;;  %v892_v9 = vadd.f32 %v1195_v4, %v843_v1 }
 0x11d   :  { %v1171_v10 = vpop.f32.mrb[12].mxu0  ;;  %v895_v12 = vadd.f32 %v1198_v8, %v846_v6 }
 0x11e   :  { %v1172_v11 = vpop.f32.mrb[13].mxu0 }
 0x11f   :  { %v1173_v13 = vadd.f32 %v1172_v11, %v1171_v10  ;;  %v1174_v14 = vpop.f32.mrb[14].mxu0  ;;  %v1199_v15 = vpop.f32.mrb[12].mxu1 }
 0x120   :  { %v1175_v16 = vpop.f32.mrb[15].mxu0  ;;  %v1200_v19 = vpop.f32.mrb[13].mxu1 }
 0x121   :  { %v851_v17 = vadd.f32 %v1173_v13, %v802_v56  ;;  %v1176_v18 = vadd.f32 %v1175_v16, %v1174_v14  ;;  %v1201_v20 = vadd.f32 %v1200_v19, %v1199_v15  ;;  %v1202_v21 = vpop.f32.mrb[14].mxu1 }
 0x122   :  { %v1203_v23 = vpop.f32.mrb[15].mxu1 }
 0x123   :  { %v854_v22 = vadd.f32 %v1176_v18, %v805_v58  ;;  %v1204_v24 = vadd.f32 %v1203_v23, %v1202_v21  ;;  %v900_v25 = vadd.f32 %v1201_v20, %v851_v17 }
 0x125   :  { %v903_v26 = vadd.f32 %v1204_v24, %v854_v22 }
 0x135   :  { %v1233_v27 = vpop.f32.mrb[16].mxu0 }
 0x136   :  { %v949_v28 = vadd.f32 %v1233_v27, %v900_v25  ;;  %v940_v29 = vpop.f32.mrb[17].mxu0 }
 0x137   :  { %v941_v30 = vadd.f32 %v940_v29, %v892_v9  ;;  %v1234_v31 = vpop.f32.mrb[18].mxu0 }
 0x138   :  { %v952_v32 = vadd.f32 %v1234_v31, %v903_v26  ;;  %v943_v33 = vpop.f32.mrb[19].mxu0  ;;  %v957_v35 = vmax.f32 %v949_v28, 0.0 }
 0x139   :  { %v944_v34 = vadd.f32 %v943_v33, %v895_v12  ;;  %v955_v37 = vmax.f32 %v941_v30, 0.0 }
 0x13a   :  { %v958_v36 = vmax.f32 %v952_v32, 0.0 }
 0x13b   :  { %v956_v38 = vmax.f32 %v944_v34, 0.0 }
 0x13c   :  { %v1090_v39 = vpack.c.bf16 %v958_v36, %v957_v35 }
 0x13d   :  { %v1085_v40 = vpack.c.bf16 %v956_v38, %v955_v37 }
 0x13e   :  { %1092 = vst [vmem:[%s1635_s3 + $0x8] sm:$0xff] %v1090_v39  }
 0x13f   :  { %1086 = vst [vmem:[%s1635_s3] sm:$0xff] %v1085_v40  }

// kernel: critic_forward.7
= control target key start
LH: loop header
LB: loop body
LE: loop exit
PB: predicated region body
PF: predicated region fallthrough
CT: control target
= control target key end

     0   :  { %v1957_v22 = vmov 1966171168   ;;  %v294_v24 = vlaneseq  ;;  %vm1501_vm0 = vcmask 1041408   ;;  %vm1513_vm1 = vcmask 1024   ;;  %s2424_s1 = inlined_call_operand.vmem [shape: bf16[2048,128], index: 1, kind: input, shape index: {}]   ;;  %s2425_s0 = inlined_call_operand.vmem [shape: bf16[2,2048], index: 0, kind: input, shape index: {}]   ;;  %s2426_s4 = inlined_call_operand.<no memory space> [shape: f32[1,1], index: 4, kind: input, shape index: {}]   ;;  %s2427_s2 = inlined_call_operand.vmem [shape: f32[1,128], index: 2, kind: input, shape index: {}]   ;;  %s2428_s3 = inlined_call_operand.vmem [shape: f32[1,128], index: 3, kind: input, shape index: {}]   ;;  %s2429_s5 = inlined_call_operand.vmem [shape: f32[2,1], index: 5, kind: output, shape index: {}]  }
   0x1   :  { %v1827_v0 = vld [vmem:[%s2424_s1 + $0x40] sm:$0xff]   ;;  %v1831_v4 = vld [vmem:[%s2424_s1 + $0x48] sm:$0xff]   ;;  %v1835_v8 = vld [vmem:[%s2424_s1 + $0x50] sm:$0xff]   ;;  %v292_v23 = vunpack.c.l.s4 %v1957_v22 }
   0x2   :  { %v1828_v1 = vld [vmem:[%s2424_s1 + $0xc0] sm:$0xff]   ;;  %1650 = vmatprep.subr.bf16.mxu0 %v1827_v0  ;;  %v1832_v5 = vld [vmem:[%s2424_s1 + $0xc8] sm:$0xff]   ;;  %v1836_v9 = vld [vmem:[%s2424_s1 + $0xd0] sm:$0xff]   ;;  %v295_v30 = vshrl.u32 %v294_v24, 7 }
   0x3   :  { %v1829_v2 = vld [vmem:[%s2424_s1] sm:$0xff]   ;;  %1672 = vmatprep.subr.bf16.mxu1 %v1828_v1  ;;  %v1833_v6 = vld [vmem:[%s2424_s1 + $0x8] sm:$0xff]   ;;  %v1837_v10 = vld [vmem:[%s2424_s1 + $0x10] sm:$0xff]   ;;  %v293_v29 = vunpack.c.0.s8 %v292_v23 }
   0x4   :  { %v1830_v3 = vld [vmem:[%s2424_s1 + $0x80] sm:$0xff]   ;;  %1651 = vmatpush3.bf16.msra.mxu0 %v1829_v2  ;;  %v1834_v7 = vld [vmem:[%s2424_s1 + $0x88] sm:$0xff]   ;;  %v1838_v11 = vld [vmem:[%s2424_s1 + $0x90] sm:$0xff]  }
   0x5   :  { %1673 = vmatpush3.bf16.msra.mxu1 %v1830_v3  ;;  %1652 = vmatprep.subr.bf16.mxu0 %v1831_v4  ;;  %v1839_v12 = vld [vmem:[%s2424_s1 + $0x58] sm:$0xff]   ;;  %v1843_v16 = vld [vmem:[%s2424_s1 + $0x60] sm:$0xff]   ;;  %v1847_v20 = vld [vmem:[%s2424_s1 + $0x68] sm:$0xff]   ;;  %v2078_v35 = vsub.s32 %v293_v29, %v295_v30 }
   0x6   :  { %1674 = vmatprep.subr.bf16.mxu1 %v1832_v5  ;;  %v1840_v13 = vld [vmem:[%s2424_s1 + $0xd8] sm:$0xff]   ;;  %v1844_v17 = vld [vmem:[%s2424_s1 + $0xe0] sm:$0xff]   ;;  %v1848_v21 = vld [vmem:[%s2424_s1 + $0xe8] sm:$0xff]  }
   0x7   :  { %v1841_v14 = vld [vmem:[%s2424_s1 + $0x18] sm:$0xff]   ;;  %v1845_v18 = vld [vmem:[%s2424_s1 + $0x20] sm:$0xff]   ;;  %v1849_v25 = vld [vmem:[%s2424_s1 + $0x28] sm:$0xff]  }
   0x8   :  { %1653 = vmatpush3.bf16.msra.mxu0 %v1833_v6  ;;  %v1842_v15 = vld [vmem:[%s2424_s1 + $0x98] sm:$0xff]   ;;  %v1846_v19 = vld [vmem:[%s2424_s1 + $0xa0] sm:$0xff]   ;;  %v1850_v26 = vld [vmem:[%s2424_s1 + $0xa8] sm:$0xff]  }
   0x9   :  { %1675 = vmatpush3.bf16.msra.mxu1 %v1834_v7  ;;  %1654 = vmatprep.subr.bf16.mxu0 %v1835_v8  ;;  %v1851_v27 = vld [vmem:[%s2424_s1 + $0x70] sm:$0xff]   ;;  %v1855_v33 = vld [vmem:[%s2424_s1 + $0x78] sm:$0xff]   ;;  %v23_v38 = vld [vmem:[%s2425_s0] sm:$0xff] }
   0xa   :  { %1676 = vmatprep.subr.bf16.mxu1 %v1836_v9  ;;  %v1852_v28 = vld [vmem:[%s2424_s1 + $0xf0] sm:$0xff]   ;;  %v1856_v34 = vld [vmem:[%s2424_s1 + $0xf8] sm:$0xff]   ;;  %v290_v39 = vcombine.high %v23_v38, %v23_v38  ;;  %v297_v40 = vrot.slane %v23_v38, %v2078_v35  ;;  %v1861_v41 = vld [vmem:[%s2424_s1 + $0x140] sm:$0xff]  }
   0xb   :  { %v1853_v31 = vld [vmem:[%s2424_s1 + $0x30] sm:$0xff]   ;;  %v1857_v36 = vld [vmem:[%s2424_s1 + $0x38] sm:$0xff]   ;;  %v1862_v42 = vld [vmem:[%s2424_s1 + $0x1c0] sm:$0xff]  }
   0xc   :  { %1655 = vmatpush3.bf16.msra.mxu0 %v1837_v10  ;;  %v1854_v32 = vld [vmem:[%s2424_s1 + $0xb0] sm:$0xff]   ;;  %v1858_v37 = vld [vmem:[%s2424_s1 + $0xb8] sm:$0xff]   ;;  %v305_v43 = vcombine.high %v297_v40, %v297_v40  ;;  %v313_v44 = vrot.slane %v297_v40, %v2078_v35  ;;  %v2098_v45 = vrot.slane %v290_v39, %v2078_v35  ;;  %v1863_v47 = vld [vmem:[%s2424_s1 + $0x100] sm:$0xff]  }
   0xd   :  { %1677 = vmatpush3.bf16.msra.mxu1 %v1838_v11  ;;  %1656 = vmatprep.subr.bf16.mxu0 %v1839_v12  ;;  %v1865_v50 = vld [vmem:[%s2424_s1 + $0x148] sm:$0xff]   ;;  %v1864_v52 = vld [vmem:[%s2424_s1 + $0x180] sm:$0xff]   ;;  %v1869_v57 = vld [vmem:[%s2424_s1 + $0x150] sm:$0xff]  }
   0xe   :  { %1678 = vmatprep.subr.bf16.mxu1 %v1840_v13  ;;  %v327_v46 = vrot.slane %v305_v43, %v2078_v35  ;;  %v306_v48 = vcombine.high %v2098_v45, %v2098_v45  ;;  %v335_v49 = vcombine.high %v313_v44, %v313_v44  ;;  %v1866_v54 = vld [vmem:[%s2424_s1 + $0x1c8] sm:$0xff]   ;;  %v1870_v59 = vld [vmem:[%s2424_s1 + $0x1d0] sm:$0xff]   ;;  %v1873_v61 = vld [vmem:[%s2424_s1 + $0x158] sm:$0xff]  }
   0xf   :  { %v1867_v55 = vld [vmem:[%s2424_s1 + $0x108] sm:$0xff]   ;;  %v1871_v60 = vld [vmem:[%s2424_s1 + $0x110] sm:$0xff]   ;;  %v1874_v63 = vld [vmem:[%s2424_s1 + $0x1d8] sm:$0xff]  }
  0x10   :  { %1657 = vmatpush3.bf16.msra.mxu0 %v1841_v14  ;;  %1204 = vmatprep.mubr.bf16.mxu0 %v327_v46  ;;  %v337_v51 = vcombine.high %v327_v46, %v327_v46  ;;  %v334_v53 = vrot.slane %v306_v48, %v2078_v35  ;;  %v1868_v58 = vld [vmem:[%s2424_s1 + $0x188] sm:$0xff]   ;;  %v1872_v62 = vld [vmem:[%s2424_s1 + $0x190] sm:$0xff]   ;;  %v1875_v0 = vld [vmem:[%s2424_s1 + $0x118] sm:$0xff]  }
  0x11   :  { %1679 = vmatpush3.bf16.msra.mxu1 %v1842_v15  ;;  %1658 = vmatprep.subr.bf16.mxu0 %v1843_v16  ;;  %v1877_v1 = vld [vmem:[%s2424_s1 + $0x160] sm:$0xff]   ;;  %v1876_v2 = vld [vmem:[%s2424_s1 + $0x198] sm:$0xff]   ;;  %v2158_v5 = vld [vmem:[%s2425_s0 + $0x8] sm:$0xff] }
  0x12   :  { %1680 = vmatprep.subr.bf16.mxu1 %v1844_v17  ;;  %1244 = vmatprep.mubr.bf16.mxu1 %v337_v51  ;;  %v338_v56 = vcombine.high %v334_v53, %v334_v53  ;;  %v1878_v3 = vld [vmem:[%s2424_s1 + $0x1e0] sm:$0xff]   ;;  %v1881_v6 = vld [vmem:[%s2424_s1 + $0x168] sm:$0xff]   ;;  %v1885_v10 = vld [vmem:[%s2424_s1 + $0x170] sm:$0xff]   ;;  %v2180_v12 = vrot.slane %v2158_v5, %v2078_v35  ;;  %v339_v46 = vcombine.high %v2158_v5, %v2158_v5 }
  0x13   :  { %v1879_v4 = vld [vmem:[%s2424_s1 + $0x120] sm:$0xff]   ;;  %v1882_v8 = vld [vmem:[%s2424_s1 + $0x1e8] sm:$0xff]   ;;  %v1886_v13 = vld [vmem:[%s2424_s1 + $0x1f0] sm:$0xff]  }
  0x14   :  { %1659 = vmatpush3.bf16.msra.mxu0 %v1845_v18  ;;  %v1880_v7 = vld [vmem:[%s2424_s1 + $0x1a0] sm:$0xff]   ;;  %v1883_v9 = vld [vmem:[%s2424_s1 + $0x128] sm:$0xff]   ;;  %v1887_v14 = vld [vmem:[%s2424_s1 + $0x130] sm:$0xff]   ;;  %v354_v17 = vcombine.high %v2180_v12, %v2180_v12 }
  0x15   :  { %1681 = vmatpush3.bf16.msra.mxu1 %v1846_v19  ;;  %1660 = vmatprep.subr.bf16.mxu0 %v1847_v20  ;;  %v1884_v11 = vld [vmem:[%s2424_s1 + $0x1a8] sm:$0xff]   ;;  %v1889_v15 = vld [vmem:[%s2424_s1 + $0x178] sm:$0xff]   ;;  %v1888_v16 = vld [vmem:[%s2424_s1 + $0x1b0] sm:$0xff]   ;;  %v320_v20 = vrot.slane %v2098_v45, %v2078_v35 }
  0x16   :  { %1682 = vmatprep.subr.bf16.mxu1 %v1848_v21  ;;  %v1890_v18 = vld [vmem:[%s2424_s1 + $0x1f8] sm:$0xff]   ;;  %v1893_v21 = vld [vmem:[%s2424_s1 + $0x240] sm:$0xff]   ;;  %v376_v23 = vrot.slane %v354_v17, %v2078_v35  ;;  %v1898_v30 = vld [vmem:[%s2424_s1 + $0x2c8] sm:$0xff]  }
  0x17   :  { %v1891_v19 = vld [vmem:[%s2424_s1 + $0x138] sm:$0xff]   ;;  %v1894_v24 = vld [vmem:[%s2424_s1 + $0x2c0] sm:$0xff]   ;;  %v1904_v38 = vld [vmem:[%s2424_s1 + $0x290] sm:$0xff]  }
  0x18   :  { %1661 = vmatpush3.bf16.msra.mxu0 %v1849_v25  ;;  %v1892_v22 = vld [vmem:[%s2424_s1 + $0x1b8] sm:$0xff]   ;;  %v1895_v25 = vld [vmem:[%s2424_s1 + $0x200] sm:$0xff]   ;;  %v386_v29 = vcombine.high %v376_v23, %v376_v23  ;;  %v1913_v45 = vld [vmem:[%s2424_s1 + $0x268] sm:$0xff]  }
  0x19   :  { %1683 = vmatpush3.bf16.msra.mxu1 %v1850_v26  ;;  %1662 = vmatprep.subr.bf16.mxu0 %v1851_v27  ;;  %v336_v26 = vcombine.high %v320_v20, %v320_v20  ;;  %v1897_v27 = vld [vmem:[%s2424_s1 + $0x248] sm:$0xff]   ;;  %v1906_v39 = vld [vmem:[%s2424_s1 + $0x2d8] sm:$0xff]   ;;  %v1910_v43 = vld [vmem:[%s2424_s1 + $0x2e0] sm:$0xff]  }
  0x1a   :  { %1684 = vmatprep.subr.bf16.mxu1 %v1852_v28  ;;  %v1896_v28 = vld [vmem:[%s2424_s1 + $0x280] sm:$0xff]   ;;  %v1907_v40 = vld [vmem:[%s2424_s1 + $0x218] sm:$0xff]   ;;  %v1914_v48 = vld [vmem:[%s2424_s1 + $0x2e8] sm:$0xff]  }
  0x1b   :  { %v1916_v51 = vld [vmem:[%s2424_s1 + $0x2a8] sm:$0xff]   ;;  %v1940_v17 = vld [vmem:[%s2424_s1 + $0x398] sm:$0xff]  }
  0x1c   :  { %1663 = vmatpush3.bf16.msra.mxu0 %v1853_v31  ;;  %v1899_v31 = vld [vmem:[%s2424_s1 + $0x208] sm:$0xff]  }
  0x1d   :  { %1685 = vmatpush3.bf16.msra.mxu1 %v1854_v32  ;;  %1664 = vmatprep.subr.bf16.mxu0 %v1855_v33  ;;  %v1901_v32 = vld [vmem:[%s2424_s1 + $0x250] sm:$0xff]   ;;  %v1900_v33 = vld [vmem:[%s2424_s1 + $0x288] sm:$0xff]  }
  0x1e   :  { %1686 = vmatprep.subr.bf16.mxu1 %v1856_v34  ;;  %v1902_v34 = vld [vmem:[%s2424_s1 + $0x2d0] sm:$0xff]  }
  0x20   :  { %1665 = vmatpush3.bf16.msra.mxu0 %v1857_v36  ;;  %v1903_v36 = vld [vmem:[%s2424_s1 + $0x210] sm:$0xff]  }
  0x21   :  { %1687 = vmatpush3.bf16.msra.mxu1 %v1858_v37  ;;  %1694 = vmatprep.subr.bf16.mxu0 %v1861_v41  ;;  %v1905_v37 = vld [vmem:[%s2424_s1 + $0x258] sm:$0xff]   ;;  %v1909_v41 = vld [vmem:[%s2424_s1 + $0x260] sm:$0xff]  }
  0x22   :  { %1716 = vmatprep.subr.bf16.mxu1 %v1862_v42  ;;  %v1908_v42 = vld [vmem:[%s2424_s1 + $0x298] sm:$0xff]  }
  0x23   :  { %1205 = vmatmul.mubr.bf16.vlgmr.msra.gmra.mrb[0].mxu0 %v313_v44  ;;  %v1911_v44 = vld [vmem:[%s2424_s1 + $0x220] sm:$0xff]  }
  0x24   :  { %1695 = vmatpush3.bf16.msra.mxu0 %v1863_v47  ;;  %1245 = vmatmul.mubr.bf16.vlgmr.msra.gmra.mrb[0].mxu1 %v335_v49  ;;  %v1912_v47 = vld [vmem:[%s2424_s1 + $0x2a0] sm:$0xff]   ;;  %v1915_v49 = vld [vmem:[%s2424_s1 + $0x228] sm:$0xff]  }
  0x25   :  { %1696 = vmatprep.subr.bf16.mxu0 %v1865_v50  ;;  %1717 = vmatpush3.bf16.msra.mxu1 %v1864_v52  ;;  %v1917_v50 = vld [vmem:[%s2424_s1 + $0x270] sm:$0xff]   ;;  %v2286_v52 = vrot.slane %v339_v46, %v2078_v35 }
  0x26   :  { %1284 = vmatprep.mubr.bf16.mxu0 %v334_v53  ;;  %1718 = vmatprep.subr.bf16.mxu1 %v1866_v54  ;;  %v1918_v53 = vld [vmem:[%s2424_s1 + $0x2f0] sm:$0xff]  }
  0x27   :  { %1324 = vmatprep.mubr.bf16.mxu1 %v338_v56  ;;  %v1919_v54 = vld [vmem:[%s2424_s1 + $0x230] sm:$0xff]  }
  0x28   :  { %1697 = vmatpush3.bf16.msra.mxu0 %v1867_v55  ;;  %v1921_v55 = vld [vmem:[%s2424_s1 + $0x278] sm:$0xff]   ;;  %v1920_v56 = vld [vmem:[%s2424_s1 + $0x2b0] sm:$0xff]  }
  0x29   :  { %1698 = vmatprep.subr.bf16.mxu0 %v1869_v57  ;;  %1719 = vmatpush3.bf16.msra.mxu1 %v1868_v58  ;;  %v355_v57 = vcombine.high %v2286_v52, %v2286_v52  ;;  %v1922_v58 = vld [vmem:[%s2424_s1 + $0x2f8] sm:$0xff]  }
  0x2a   :  { %1720 = vmatprep.subr.bf16.mxu1 %v1870_v59  ;;  %v1923_v59 = vld [vmem:[%s2424_s1 + $0x238] sm:$0xff]  }
  0x2c   :  { %1699 = vmatpush3.bf16.msra.mxu0 %v1871_v60  ;;  %v362_v60 = vrot.slane %v2180_v12, %v2078_v35  ;;  %v1937_v12 = vld [vmem:[%s2424_s1 + $0x358] sm:$0xff]  }
  0x2d   :  { %1700 = vmatprep.subr.bf16.mxu0 %v1873_v61  ;;  %1721 = vmatpush3.bf16.msra.mxu1 %v1872_v62  ;;  %v1925_v61 = vld [vmem:[%s2424_s1 + $0x340] sm:$0xff]   ;;  %v1924_v62 = vld [vmem:[%s2424_s1 + $0x2b8] sm:$0xff]  }
  0x2e   :  { %1722 = vmatprep.subr.bf16.mxu1 %v1874_v63  ;;  %v383_v63 = vrot.slane %v355_v57, %v2078_v35 }
  0x30   :  { %1701 = vmatpush3.bf16.msra.mxu0 %v1875_v0  ;;  %v1926_v0 = vld [vmem:[%s2424_s1 + $0x3c0] sm:$0xff]   ;;  %v387_v5 = vcombine.high %v383_v63, %v383_v63 }
  0x31   :  { %1702 = vmatprep.subr.bf16.mxu0 %v1877_v1  ;;  %1723 = vmatpush3.bf16.msra.mxu1 %v1876_v2  ;;  %v1927_v1 = vld [vmem:[%s2424_s1 + $0x300] sm:$0xff]   ;;  %v384_v2 = vcombine.high %v362_v60, %v362_v60 }
  0x32   :  { %1724 = vmatprep.subr.bf16.mxu1 %v1878_v3  ;;  %v1929_v3 = vld [vmem:[%s2424_s1 + $0x348] sm:$0xff]  }
  0x34   :  { %1703 = vmatpush3.bf16.msra.mxu0 %v1879_v4  ;;  %v1928_v4 = vld [vmem:[%s2424_s1 + $0x380] sm:$0xff]  }
  0x35   :  { %1704 = vmatprep.subr.bf16.mxu0 %v1881_v6  ;;  %1725 = vmatpush3.bf16.msra.mxu1 %v1880_v7  ;;  %v1930_v6 = vld [vmem:[%s2424_s1 + $0x3c8] sm:$0xff]  }
  0x36   :  { %1726 = vmatprep.subr.bf16.mxu1 %v1882_v8  ;;  %v1931_v7 = vld [vmem:[%s2424_s1 + $0x308] sm:$0xff]   ;;  %v1933_v8 = vld [vmem:[%s2424_s1 + $0x350] sm:$0xff]  }
  0x38   :  { %1705 = vmatpush3.bf16.msra.mxu0 %v1883_v9  ;;  %v1932_v9 = vld [vmem:[%s2424_s1 + $0x388] sm:$0xff]  }
  0x39   :  { %1706 = vmatprep.subr.bf16.mxu0 %v1885_v10  ;;  %1727 = vmatpush3.bf16.msra.mxu1 %v1884_v11  ;;  %v1934_v10 = vld [vmem:[%s2424_s1 + $0x3d0] sm:$0xff]  }
  0x3a   :  { %1728 = vmatprep.subr.bf16.mxu1 %v1886_v13  ;;  %v1935_v11 = vld [vmem:[%s2424_s1 + $0x310] sm:$0xff]  }
  0x3b   :  { %v1936_v13 = vld [vmem:[%s2424_s1 + $0x390] sm:$0xff]  }
  0x3c   :  { %1707 = vmatpush3.bf16.msra.mxu0 %v1887_v14  ;;  %v1938_v14 = vld [vmem:[%s2424_s1 + $0x3d8] sm:$0xff]  }
  0x3d   :  { %1708 = vmatprep.subr.bf16.mxu0 %v1889_v15  ;;  %1729 = vmatpush3.bf16.msra.mxu1 %v1888_v16  ;;  %v1939_v15 = vld [vmem:[%s2424_s1 + $0x318] sm:$0xff]   ;;  %v1941_v16 = vld [vmem:[%s2424_s1 + $0x360] sm:$0xff]  }
  0x3e   :  { %1730 = vmatprep.subr.bf16.mxu1 %v1890_v18  ;;  %v1942_v18 = vld [vmem:[%s2424_s1 + $0x3e0] sm:$0xff]  }
  0x40   :  { %1709 = vmatpush3.bf16.msra.mxu0 %v1891_v19  ;;  %v1943_v19 = vld [vmem:[%s2424_s1 + $0x320] sm:$0xff]  }
  0x41   :  { %1738 = vmatprep.subr.bf16.mxu0 %v1893_v21  ;;  %1731 = vmatpush3.bf16.msra.mxu1 %v1892_v22  ;;  %v1944_v21 = vld [vmem:[%s2424_s1 + $0x3a0] sm:$0xff]   ;;  %v1946_v22 = vld [vmem:[%s2424_s1 + $0x3e8] sm:$0xff]  }
  0x42   :  { %1760 = vmatprep.subr.bf16.mxu1 %v1894_v24  ;;  %v1949_v24 = vld [vmem:[%s2424_s1 + $0x370] sm:$0xff]  }
  0x43   :  { %1285 = vmatmul.mubr.bf16.vlgmr.msra.gmra.mrb[4].mxu0 %v320_v20  ;;  %v1945_v20 = vld [vmem:[%s2424_s1 + $0x368] sm:$0xff]  }
  0x44   :  { %1739 = vmatpush3.bf16.msra.mxu0 %v1895_v25  ;;  %1364 = vmatprep.mubr.bf16.mxu0 %v376_v23  ;;  %v1947_v23 = vld [vmem:[%s2424_s1 + $0x328] sm:$0xff]  }
  0x45   :  { %1325 = vmatmul.mubr.bf16.vlgmr.msra.gmra.mrb[4].mxu1 %v336_v26  ;;  %1740 = vmatprep.subr.bf16.mxu0 %v1897_v27  ;;  %v1948_v25 = vld [vmem:[%s2424_s1 + $0x3a8] sm:$0xff]   ;;  %v1950_v26 = vld [vmem:[%s2424_s1 + $0x3f0] sm:$0xff]  }
  0x46   :  { %1761 = vmatpush3.bf16.msra.mxu1 %v1896_v28  ;;  %1404 = vmatprep.mubr.bf16.mxu1 %v386_v29  ;;  %v1951_v27 = vld [vmem:[%s2424_s1 + $0x330] sm:$0xff]   ;;  %v1953_v28 = vld [vmem:[%s2424_s1 + $0x378] sm:$0xff]  }
  0x47   :  { %1762 = vmatprep.subr.bf16.mxu1 %v1898_v30  ;;  %v1952_v29 = vld [vmem:[%s2424_s1 + $0x3b0] sm:$0xff]   ;;  %v1954_v30 = vld [vmem:[%s2424_s1 + $0x3f8] sm:$0xff]  }
  0x48   :  { %1741 = vmatpush3.bf16.msra.mxu0 %v1899_v31  ;;  %v1955_v31 = vld [vmem:[%s2424_s1 + $0x338] sm:$0xff]  }
  0x49   :  { %1742 = vmatprep.subr.bf16.mxu0 %v1901_v32  ;;  %v369_v32 = vrot.slane %v2286_v52, %v2078_v35  ;;  %v1519_v35 = vld [vmem:[%s2427_s2] ss:$0 sm:$0xff] }
  0x4a   :  { %1763 = vmatpush3.bf16.msra.mxu1 %v1900_v33  ;;  %v1956_v33 = vld [vmem:[%s2424_s1 + $0x3b8] sm:$0xff]  }
  0x4b   :  { %1764 = vmatprep.subr.bf16.mxu1 %v1902_v34  ;;  %v385_v34 = vcombine.high %v369_v32, %v369_v32 }
  0x4c   :  { %1743 = vmatpush3.bf16.msra.mxu0 %v1903_v36  ;;  %v10_v36 = vstv %s2426_s4 }
  0x4d   :  { %1744 = vmatprep.subr.bf16.mxu0 %v1905_v37  ;;  %11 = vst [vmem:[#allocation2] sm:$0x1] %v10_v36 }
  0x4e   :  { %1765 = vmatpush3.bf16.msra.mxu1 %v1904_v38 }
  0x4f   :  { %1766 = vmatprep.subr.bf16.mxu1 %v1906_v39 }
  0x50   :  { %1745 = vmatpush3.bf16.msra.mxu0 %v1907_v40 }
  0x51   :  { %1746 = vmatprep.subr.bf16.mxu0 %v1909_v41 }
  0x52   :  { %1767 = vmatpush3.bf16.msra.mxu1 %v1908_v42 }
  0x53   :  { %1768 = vmatprep.subr.bf16.mxu1 %v1910_v43 }
  0x54   :  { %1747 = vmatpush3.bf16.msra.mxu0 %v1911_v44 }
  0x55   :  { %1748 = vmatprep.subr.bf16.mxu0 %v1913_v45 }
  0x56   :  { %1769 = vmatpush3.bf16.msra.mxu1 %v1912_v47 }
  0x57   :  { %1770 = vmatprep.subr.bf16.mxu1 %v1914_v48 }
  0x58   :  { %1749 = vmatpush3.bf16.msra.mxu0 %v1915_v49 }
  0x59   :  { %1750 = vmatprep.subr.bf16.mxu0 %v1917_v50 }
  0x5a   :  { %1771 = vmatpush3.bf16.msra.mxu1 %v1916_v51 }
  0x5b   :  { %1772 = vmatprep.subr.bf16.mxu1 %v1918_v53 }
  0x5c   :  { %1751 = vmatpush3.bf16.msra.mxu0 %v1919_v54 }
  0x5d   :  { %1752 = vmatprep.subr.bf16.mxu0 %v1921_v55 }
  0x5e   :  { %1773 = vmatpush3.bf16.msra.mxu1 %v1920_v56 }
  0x5f   :  { %1774 = vmatprep.subr.bf16.mxu1 %v1922_v58 }
  0x60   :  { %1753 = vmatpush3.bf16.msra.mxu0 %v1923_v59 }
  0x61   :  { %1782 = vmatprep.subr.bf16.mxu0 %v1925_v61 }
  0x62   :  { %1775 = vmatpush3.bf16.msra.mxu1 %v1924_v62 }
  0x63   :  { %1365 = vmatmul.mubr.bf16.vlgmr.msra.gmra.mrb[8].mxu0 %v362_v60  ;;  %1804 = vmatprep.subr.bf16.mxu1 %v1926_v0 }
  0x64   :  { %1783 = vmatpush3.bf16.msra.mxu0 %v1927_v1  ;;  %1444 = vmatprep.mubr.bf16.mxu0 %v383_v63 }
  0x65   :  { %1405 = vmatmul.mubr.bf16.vlgmr.msra.gmra.mrb[8].mxu1 %v384_v2  ;;  %1784 = vmatprep.subr.bf16.mxu0 %v1929_v3 }
  0x66   :  { %1805 = vmatpush3.bf16.msra.mxu1 %v1928_v4  ;;  %1484 = vmatprep.mubr.bf16.mxu1 %v387_v5 }
  0x67   :  { %1806 = vmatprep.subr.bf16.mxu1 %v1930_v6 }
  0x68   :  { %1785 = vmatpush3.bf16.msra.mxu0 %v1931_v7 }
  0x69   :  { %1786 = vmatprep.subr.bf16.mxu0 %v1933_v8 }
  0x6a   :  { %1807 = vmatpush3.bf16.msra.mxu1 %v1932_v9 }
  0x6b   :  { %1808 = vmatprep.subr.bf16.mxu1 %v1934_v10 }
  0x6c   :  { %1787 = vmatpush3.bf16.msra.mxu0 %v1935_v11 }
  0x6d   :  { %1788 = vmatprep.subr.bf16.mxu0 %v1937_v12 }
  0x6e   :  { %1809 = vmatpush3.bf16.msra.mxu1 %v1936_v13 }
  0x6f   :  { %1810 = vmatprep.subr.bf16.mxu1 %v1938_v14 }
  0x70   :  { %1789 = vmatpush3.bf16.msra.mxu0 %v1939_v15 }
  0x71   :  { %1790 = vmatprep.subr.bf16.mxu0 %v1941_v16 }
  0x72   :  { %1811 = vmatpush3.bf16.msra.mxu1 %v1940_v17 }
  0x73   :  { %1812 = vmatprep.subr.bf16.mxu1 %v1942_v18 }
  0x74   :  { %1791 = vmatpush3.bf16.msra.mxu0 %v1943_v19 }
  0x75   :  { %1792 = vmatprep.subr.bf16.mxu0 %v1945_v20 }
  0x76   :  { %1813 = vmatpush3.bf16.msra.mxu1 %v1944_v21  ;;  %v1648_v21 = vld [vmem:[%s2428_s3] ss:$0 sm:$0xff] }
  0x77   :  { %1814 = vmatprep.subr.bf16.mxu1 %v1946_v22 }
  0x78   :  { %1793 = vmatpush3.bf16.msra.mxu0 %v1947_v23 }
  0x79   :  { %1794 = vmatprep.subr.bf16.mxu0 %v1949_v24 }
  0x7a   :  { %1815 = vmatpush3.bf16.msra.mxu1 %v1948_v25  ;;  %v1649_v25 = vld [vmem:[#allocation2] ss:$0 sm:$0xff] }
  0x7b   :  { %1816 = vmatprep.subr.bf16.mxu1 %v1950_v26 }
  0x7c   :  { %1795 = vmatpush3.bf16.msra.mxu0 %v1951_v27 }
  0x7d   :  { %1796 = vmatprep.subr.bf16.mxu0 %v1953_v28 }
  0x7e   :  { %1817 = vmatpush3.bf16.msra.mxu1 %v1952_v29 }
  0x7f   :  { %1818 = vmatprep.subr.bf16.mxu1 %v1954_v30 }
  0x80   :  { %1797 = vmatpush3.bf16.msra.mxu0 %v1955_v31 }
  0x82   :  { %1819 = vmatpush3.bf16.msra.mxu1 %v1956_v33 }
  0x83   :  { %1445 = vmatmul.mubr.bf16.vlgmr.msra.gmra.mrb[12].mxu0 %v369_v32 }
  0x85   :  { %1485 = vmatmul.mubr.bf16.vlgmr.msra.gmra.mrb[12].mxu1 %v385_v34 }
  0xf6   :  { %v1666_v37 = vpop.f32.mrb[0].mxu0 }
  0xf7   :  { %v1667_v38 = vpop.f32.mrb[1].mxu0  ;;  %v1688_v39 = vpop.f32.mrb[0].mxu1 }
  0xf8   :  { %v1668_v40 = vadd.f32 %v1667_v38, %v1666_v37  ;;  %v1669_v41 = vpop.f32.mrb[2].mxu0  ;;  %v1689_v42 = vpop.f32.mrb[1].mxu1 }
  0xf9   :  { %v1670_v43 = vpop.f32.mrb[3].mxu0  ;;  %v1690_v45 = vadd.f32 %v1689_v42, %v1688_v39  ;;  %v1691_v46 = vpop.f32.mrb[2].mxu1 }
  0xfa   :  { %v1207_v44 = vadd.f32 %v1668_v40, %v1519_v35  ;;  %v1692_v47 = vpop.f32.mrb[3].mxu1 }
  0xfc   :  { %v1247_v48 = vadd.f32 %v1690_v45, %v1207_v44 }
 0x116   :  { %v1710_v49 = vpop.f32.mrb[4].mxu0 }
 0x117   :  { %v1711_v50 = vpop.f32.mrb[5].mxu0 }
 0x118   :  { %v1732_v51 = vpop.f32.mrb[4].mxu1  ;;  %v1712_v52 = vadd.f32 %v1711_v50, %v1710_v49  ;;  %v1713_v53 = vpop.f32.mrb[6].mxu0 }
 0x119   :  { %v1733_v54 = vpop.f32.mrb[5].mxu1  ;;  %v1714_v55 = vpop.f32.mrb[7].mxu0 }
 0x11a   :  { %v1287_v56 = vadd.f32 %v1712_v52, %v1247_v48  ;;  %v1734_v57 = vadd.f32 %v1733_v54, %v1732_v51  ;;  %v1735_v58 = vpop.f32.mrb[6].mxu1 }
 0x11b   :  { %v1736_v59 = vpop.f32.mrb[7].mxu1 }
 0x11c   :  { %v1327_v60 = vadd.f32 %v1734_v57, %v1287_v56 }
 0x136   :  { %v1754_v61 = vpop.f32.mrb[8].mxu0 }
 0x137   :  { %v1755_v62 = vpop.f32.mrb[9].mxu0 }
 0x138   :  { %v1776_v63 = vpop.f32.mrb[8].mxu1  ;;  %v1756_v0 = vadd.f32 %v1755_v62, %v1754_v61  ;;  %v1757_v1 = vpop.f32.mrb[10].mxu0 }
 0x139   :  { %v1777_v2 = vpop.f32.mrb[9].mxu1  ;;  %v1758_v3 = vpop.f32.mrb[11].mxu0 }
 0x13a   :  { %v1367_v4 = vadd.f32 %v1756_v0, %v1327_v60  ;;  %v1778_v5 = vadd.f32 %v1777_v2, %v1776_v63  ;;  %v1779_v6 = vpop.f32.mrb[10].mxu1 }
 0x13b   :  { %v1780_v7 = vpop.f32.mrb[11].mxu1 }
 0x13c   :  { %v1407_v8 = vadd.f32 %v1778_v5, %v1367_v4 }
 0x156   :  { %v1798_v9 = vpop.f32.mrb[12].mxu0 }
 0x157   :  { %v1799_v10 = vpop.f32.mrb[13].mxu0 }
 0x158   :  { %v1820_v11 = vpop.f32.mrb[12].mxu1  ;;  %v1800_v12 = vadd.f32 %v1799_v10, %v1798_v9  ;;  %v1801_v13 = vpop.f32.mrb[14].mxu0 }
 0x159   :  { %v1821_v14 = vpop.f32.mrb[13].mxu1  ;;  %v1802_v15 = vpop.f32.mrb[15].mxu0 }
 0x15a   :  { %v1447_v16 = vadd.f32 %v1800_v12, %v1407_v8  ;;  %v1822_v17 = vadd.f32 %v1821_v14, %v1820_v11  ;;  %v1823_v18 = vpop.f32.mrb[14].mxu1 }
 0x15b   :  { %v1824_v19 = vpop.f32.mrb[15].mxu1 }
 0x15c   :  { %v1487_v20 = vadd.f32 %v1822_v17, %v1447_v16 }
 0x15e   :  { %v1492_v22 = vmax.f32 %v1487_v20, 0.0 }
 0x160   :  { %v1500_v23 = vmul.f32 %v1648_v21, %v1492_v22 }
 0x162   :  { %v1502_v24 = vsel %vm1501_vm0, %v1500_v23, 0.0 }
 0x163   :  { %1503 = vadd.xlane.f32.xlu0 %v1502_v24 }
 0x1f0   :  { %v1504_v26 = vpop.xlane.xlu0 %1503 }
 0x1f1   :  { %v1512_v27 = vadd.f32 %v1649_v25, %v1504_v26 }
 0x1f3   :  { %1514 = vst.msk [vmem:[%s2429_s5] sm:$0x3] %vm1513_vm1, %v1512_v27 }

</bundles_post_ra>
